<compile_context>
chip_gen: v5e
topology: v5e:2x2
jax: 0.10.0
libtpu: 0.0.40
codegen_flags: <defaults>
</compile_context>

<pallas_src>
import functools

import jax
import jax.numpy as jnp
from jax.experimental import pallas as pl
from jax.experimental.pallas import tpu as pltpu


# --------------------------------------------------------------------------------------
# Fused 3x3 conv (+ optional residual add) Pallas kernel
# --------------------------------------------------------------------------------------
def _conv3x3_kernel(x_ref, w_ref, *rest, Ho, Wo, Wu, stride, has_sc):
    # x_ref : (1, P, Hu*Wu, Cin)  bf16  phase-decomposed, spatially flattened input
    # w_ref : (9, Cin, Cout)      bf16  per-tap weights
    # sc_ref: (1, Ho*Wo, Cout)    bf16  optional residual shortcut (fused add)
    # o_ref : (1, Ho*Wo, Cout)
    if has_sc:
        sc_ref, o_ref = rest
    else:
        (o_ref,) = rest
    s = stride
    cout = o_ref.shape[-1]
    L = Ho * Wu
    acc = jnp.zeros((L, cout), jnp.float32)
    for dh in range(3):
        for dw in range(3):
            t = dh * 3 + dw
            p = (dh % s) * s + (dw % s)          # which stride-phase image
            off = (dh // s) * Wu + (dw // s)     # flat row offset inside that phase
            a = x_ref[0, p, off:off + L, :]      # (L, Cin) bf16, straight from VMEM
            acc = acc + jnp.dot(a, w_ref[t], preferred_element_type=jnp.float32)
    # Compact padded-width rows (Wu -> Wo) and store, fusing the residual add.
    for ho in range(Ho):
        row = acc[ho * Wu:ho * Wu + Wo, :]
        if has_sc:
            row = row + sc_ref[0, ho * Wo:(ho + 1) * Wo, :].astype(jnp.float32)
        o_ref[0, ho * Wo:(ho + 1) * Wo, :] = row.astype(o_ref.dtype)


def conv3x3(x, w9, stride=1, sc=None, out_dtype=jnp.bfloat16):
    """3x3 conv, padding=1, bias=False, NHWC.  w9: (9, Cin, Cout) bf16 (tap-major).

    The 3x3 taps are accumulated inside a single Pallas kernel (no im2col in HBM);
    `sc` (same shape as the output) is added in the kernel epilogue when given.
    # TODO(synk): dilation > 1 not supported (reference config uses dilation == 1).
    """
    N, H, W, Cin = x.shape
    Cout = w9.shape[-1]
    s = stride
    Ho = (H - 1) // s + 1
    Wo = (W - 1) // s + 1
    q = 2 // s                  # max per-phase tap offset (s=1 -> 2, s=2 -> 1)
    Hu = Ho + q + 1             # +1 guard row keeps flattened tap slices in bounds
    Wu = Wo + q
    P = s * s
    Cin_p = ((Cin + 7) // 8) * 8

    xp = jnp.pad(x.astype(jnp.bfloat16),
                 ((0, 0), (1, 1), (1, 1), (0, Cin_p - Cin)))
    phases = []
    for ph in range(s):
        for pw in range(s):
            pimg = xp[:, ph::s, pw::s, :][:, :Hu, :Wu, :]
            hc, wc = pimg.shape[1], pimg.shape[2]
            pimg = jnp.pad(pimg, ((0, 0), (0, Hu - hc), (0, Wu - wc), (0, 0)))
            phases.append(pimg)
    xflat = jnp.stack(phases, axis=1).reshape(N, P, Hu * Wu, Cin_p)
    w9p = jnp.pad(w9.astype(jnp.bfloat16), ((0, 0), (0, Cin_p - Cin), (0, 0)))

    in_specs = [
        pl.BlockSpec((1, P, Hu * Wu, Cin_p), lambda n: (n, 0, 0, 0)),
        pl.BlockSpec((9, Cin_p, Cout), lambda n: (0, 0, 0)),
    ]
    args = [xflat, w9p]
    if sc is not None:
        in_specs.append(pl.BlockSpec((1, Ho * Wo, Cout), lambda n: (n, 0, 0)))
        args.append(sc.reshape(N, Ho * Wo, Cout).astype(jnp.bfloat16))

    kern = functools.partial(_conv3x3_kernel, Ho=Ho, Wo=Wo, Wu=Wu, stride=s,
                             has_sc=sc is not None)
    out = pl.pallas_call(
        kern,
        out_shape=jax.ShapeDtypeStruct((N, Ho * Wo, Cout), out_dtype),
        grid_spec=pltpu.PrefetchScalarGridSpec(
            num_scalar_prefetch=0,
            grid=(N,),
            in_specs=in_specs,
            out_specs=pl.BlockSpec((1, Ho * Wo, Cout), lambda n: (n, 0, 0)),
        ),
        compiler_params=pltpu.CompilerParams(dimension_semantics=("parallel",)),
    )(*args)
    return out.reshape(N, Ho, Wo, Cout)


# --------------------------------------------------------------------------------------
# Lane-dense GroupNorm (+ optional ReLU) Pallas kernel
# --------------------------------------------------------------------------------------
def _gn_kernel(x_ref, gam_ref, bet_ref, gmat_ref, gmatt_ref, o_ref,
               *, eps, apply_relu, group_size):
    # x_ref: (TB, HW*C);  gam/bet: (1, HW*C);  gmat: (HW*C, G);  gmatt: (G, HW*C)
    x = x_ref[...].astype(jnp.float32)                       # f32 math (v5e-safe)
    gsum = jnp.dot(x, gmat_ref[...], preferred_element_type=jnp.float32)      # (TB, G)
    gsq = jnp.dot(x * x, gmat_ref[...], preferred_element_type=jnp.float32)   # (TB, G)
    mean = gsum / group_size
    var = jnp.maximum(gsq / group_size - mean * mean, 0.0)   # clamp cancellation
    inv = jax.lax.rsqrt(var + eps)
    mean_b = jnp.dot(mean, gmatt_ref[...], preferred_element_type=jnp.float32)  # (TB, HWC)
    inv_b = jnp.dot(inv, gmatt_ref[...], preferred_element_type=jnp.float32)
    y = (x - mean_b) * inv_b * gam_ref[...] + bet_ref[...]
    if apply_relu:
        y = jnp.maximum(y, 0.0)
    o_ref[...] = y.astype(o_ref.dtype)


def group_norm(x_nhwc, gamma, beta, num_groups, eps=1e-5, apply_relu=False,
               out_dtype=jnp.bfloat16):
    """GroupNorm (optionally fused with ReLU).  Each sample is one (HW*C,) row so the
    long axis is on lanes; per-group stats via one-hot matmuls (no in-kernel reshapes)."""
    N, H, W, C = x_nhwc.shape
    G = num_groups
    assert C % G == 0
    cpg = C // G
    HWC = H * W * C
    xf = x_nhwc.reshape(N, HWC)
    g_of = jnp.tile(jnp.arange(C, dtype=jnp.int32) // cpg, H * W)            # (HWC,)
    gmat = (g_of[:, None] == jnp.arange(G, dtype=jnp.int32)[None, :]).astype(jnp.float32)
    gmatt = gmat.T
    gam = jnp.tile(gamma.astype(jnp.float32), H * W).reshape(1, HWC)
    bet = jnp.tile(beta.astype(jnp.float32), H * W).reshape(1, HWC)

    TB = N if N <= 8 else 8
    kern = functools.partial(_gn_kernel, eps=eps, apply_relu=apply_relu,
                             group_size=float(H * W * cpg))
    out = pl.pallas_call(
        kern,
        out_shape=jax.ShapeDtypeStruct((N, HWC), out_dtype),
        grid_spec=pltpu.PrefetchScalarGridSpec(
            num_scalar_prefetch=0,
            grid=(pl.cdiv(N, TB),),
            in_specs=[
                pl.BlockSpec((TB, HWC), lambda i: (i, 0)),
                pl.BlockSpec((1, HWC), lambda i: (0, 0)),
                pl.BlockSpec((1, HWC), lambda i: (0, 0)),
                pl.BlockSpec((HWC, G), lambda i: (0, 0)),
                pl.BlockSpec((G, HWC), lambda i: (0, 0)),
            ],
            out_specs=pl.BlockSpec((TB, HWC), lambda i: (i, 0)),
        ),
        compiler_params=pltpu.CompilerParams(dimension_semantics=("parallel",)),
    )(xf, gam, bet, gmat, gmatt)
    return out.reshape(N, H, W, C)


# --------------------------------------------------------------------------------------
# Pooling glue (XLA)
# --------------------------------------------------------------------------------------
def maxpool3x3_s2_p1(x):
    neg = jnp.array(-jnp.inf, dtype=x.dtype)
    return jax.lax.reduce_window(
        x, neg, jax.lax.max,
        window_dimensions=(1, 3, 3, 1),
        window_strides=(1, 2, 2, 1),
        padding=((0, 0), (1, 1), (1, 1), (0, 0)))


def avgpool_s(x, s):
    # AvgPool2d(s, s, ceil_mode=True, count_include_pad=False); spatial dims here are
    # always divisible by s so ceil_mode is a no-op.
    # TODO(synk): handle ceil_mode partial windows for non-divisible spatial sizes.
    if s == 1:
        return x
    summed = jax.lax.reduce_window(
        x, jnp.array(0.0, x.dtype), jax.lax.add,
        window_dimensions=(1, s, s, 1),
        window_strides=(1, s, s, 1),
        padding='VALID')
    return summed / float(s * s)


# --------------------------------------------------------------------------------------
# Model definition (functional, deterministic init)
# --------------------------------------------------------------------------------------
def adaptive_groups(ch):
    # TODO(synk): original `adaptive_groups` helper is not in the reference source;
    # use the largest of {32,16,8,4,2,1} that divides `ch`.
    for g in (32, 16, 8, 4, 2, 1):
        if ch % g == 0:
            return g
    return 1


def conv3x3_weight(key, cin, cout):
    # kaiming_normal_(mode='fan_out', nonlinearity='relu'), stored tap-major bf16.
    fan_out = cout * 9
    std = (2.0 / fan_out) ** 0.5
    w = std * jax.random.normal(key, (cout, cin, 3, 3), jnp.float32)
    return jnp.transpose(w, (2, 3, 1, 0)).reshape(9, cin, cout).astype(jnp.bfloat16)


def conv1x1_weight(key, cin, cout):
    fan_out = cout
    std = (2.0 / fan_out) ** 0.5
    w = std * jax.random.normal(key, (cout, cin), jnp.float32)
    return w.T  # (cin, cout) f32 -- used by plain jnp.dot/einsum


def gn_params(c):
    return {'g': jnp.ones((c,), jnp.float32), 'b': jnp.zeros((c,), jnp.float32)}


def build_params(key, in_channels, nb_classes, layers, channels, strides):
    keys = iter(jax.random.split(key, 256))
    half = channels[0] // 2
    params = {
        'stem': {
            'conv1': conv3x3_weight(next(keys), in_channels, half),
            'gn1': gn_params(half),
            'conv2': conv3x3_weight(next(keys), half, half),
            'gn2': gn_params(half),
            'conv3': conv3x3_weight(next(keys), half, channels[0]),
            'gn3': gn_params(channels[0]),
        }
    }
    in_planes = channels[0]
    stages = []
    for planes, nb, stride in zip(channels, layers, strides):
        blocks = []
        for b in range(nb):
            st = stride if b == 0 else 1
            bp = {
                'gn1': gn_params(in_planes),
                'conv1': conv3x3_weight(next(keys), in_planes, planes),
                'gn2': gn_params(planes),
                'conv2': conv3x3_weight(next(keys), planes, planes),
                'in_planes': in_planes, 'planes': planes, 'stride': st,
            }
            if st != 1 or in_planes != planes:  # BasicBlock expansion == 1
                bp['ds_w'] = conv1x1_weight(next(keys), in_planes, planes)
                bp['ds_gn'] = gn_params(planes)
            blocks.append(bp)
            in_planes = planes
        stages.append(blocks)
    params['stages'] = stages

    feat = channels[-1]  # * BasicBlock.expansion (=1)
    bound = 1.0 / (feat ** 0.5)
    params['fc_w'] = jax.random.uniform(next(keys), (nb_classes, feat),
                                        jnp.float32, -bound, bound)
    params['fc_b'] = jax.random.uniform(next(keys), (nb_classes,),
                                        jnp.float32, -bound, bound)
    return params


def basic_block_forward(x, bp):
    in_planes, planes, stride = bp['in_planes'], bp['planes'], bp['stride']
    if stride != 1 or in_planes != planes:
        sc = avgpool_s(x.astype(jnp.float32), stride)
        sc = jnp.einsum('nhwc,cd->nhwd', sc, bp['ds_w'])       # tiny 1x1 conv: plain XLA
        sc = group_norm(sc, bp['ds_gn']['g'], bp['ds_gn']['b'],
                        adaptive_groups(planes))
    else:
        sc = x
    out = group_norm(x, bp['gn1']['g'], bp['gn1']['b'],
                     adaptive_groups(in_planes), apply_relu=True)
    out = conv3x3(out, bp['conv1'], stride=stride)
    out = group_norm(out, bp['gn2']['g'], bp['gn2']['b'],
                     adaptive_groups(planes), apply_relu=True)
    out = conv3x3(out, bp['conv2'], sc=sc)                     # residual add fused
    return out


def resnet_forward(x_nchw, params):
    # Input follows PyTorch NCHW convention; convert to NHWC bf16 for the kernels.
    x = jnp.transpose(x_nchw, (0, 2, 3, 1)).astype(jnp.bfloat16)
    sp = params['stem']
    out = conv3x3(x, sp['conv1'], stride=2)
    out = group_norm(out, sp['gn1']['g'], sp['gn1']['b'],
                     adaptive_groups(out.shape[-1]), apply_relu=True)
    out = conv3x3(out, sp['conv2'])
    out = group_norm(out, sp['gn2']['g'], sp['gn2']['b'],
                     adaptive_groups(out.shape[-1]), apply_relu=True)
    out = conv3x3(out, sp['conv3'])
    out = group_norm(out, sp['gn3']['g'], sp['gn3']['b'],
                     adaptive_groups(out.shape[-1]), apply_relu=True)
    out = maxpool3x3_s2_p1(out)

    for stage in params['stages']:
        for bp in stage:
            out = basic_block_forward(out, bp)

    pooled = out.astype(jnp.float32).mean(axis=(1, 2))         # == torch .mean(dim=(2,3))
    logits = jnp.dot(pooled, params['fc_w'].T) + params['fc_b'][None, :]
    return logits


# --------------------------------------------------------------------------------------
if __name__ == "__main__":
    key = jax.random.PRNGKey(0)
    k_param, k_x = jax.random.split(key)

    # Small config consistent with ResNet(in_channels, nb_classes, block='basic', ...)
    in_channels = 3
    nb_classes = 10
    layers = (1, 1, 1, 1)
    channels = (8, 16, 32, 64)
    strides = (1, 2, 2, 2)

    params = build_params(k_param, in_channels, nb_classes, layers, channels, strides)
    x = jax.random.normal(k_x, (2, in_channels, 32, 32), jnp.float32)  # NCHW like PyTorch

    logits = resnet_forward(x, params)
    jax.block_until_ready(logits)
    assert logits.shape == (2, nb_classes), logits.shape
    print("KERNEL_OK")
</pallas_src>

<mosaic_0001>
module attributes {stable_mosaic.version = 11 : i64} {
  func.func @_conv3x3_kernel(%arg0: i32, %arg1: memref<1x4x306x8xbf16, #tpu.memory_space<vmem>>, %arg2: memref<9x8x4xbf16, #tpu.memory_space<vmem>>, %arg3: memref<1x256x4xbf16, #tpu.memory_space<vmem>>) attributes {dimension_semantics = [#tpu.dimension_semantics<parallel>], iteration_bounds = array<i64: 2>, scalar_prefetch = 0 : i64, scratch_operands = 0 : i64, tpu.core_type = #tpu.core_type<tc>, window_params = [{transform_indices = @transform_0, window_bounds = array<i64: 1, 4, 306, 8>}, {pipeline_mode = #tpu.pipeline_mode<synchronous>, transform_indices = @transform_1, window_bounds = array<i64: 9, 8, 4>}, {transform_indices = @transform_2, window_bounds = array<i64: 1, 256, 4>}]} {
    %cst = arith.constant 0.000000e+00 : f32
    %0 = vector.broadcast %cst : f32 to vector<272x4xf32>
    %c0 = arith.constant 0 : index
    %c0_0 = arith.constant 0 : index
    %c0_1 = arith.constant 0 : index
    %c0_2 = arith.constant 0 : index
    %1 = vector.load %arg1[%c0, %c0_0, %c0_1, %c0_2] : memref<1x4x306x8xbf16, #tpu.memory_space<vmem>>, vector<1x1x272x8xbf16>
    %2 = vector.shape_cast %1 : vector<1x1x272x8xbf16> to vector<272x8xbf16>
    %c0_3 = arith.constant 0 : index
    %c0_4 = arith.constant 0 : index
    %c0_5 = arith.constant 0 : index
    %3 = vector.load %arg2[%c0_3, %c0_4, %c0_5] : memref<9x8x4xbf16, #tpu.memory_space<vmem>>, vector<1x8x4xbf16>
    %4 = vector.shape_cast %3 : vector<1x8x4xbf16> to vector<8x4xbf16>
    %cst_6 = arith.constant dense<0.000000e+00> : vector<272x4xf32>
    %5 = tpu.matmul %2, %4, %cst_6 {dimension_numbers = #tpu.dot_dimension_numbers<[1], [0], [0], [1], [0, 0, 1, 1], [], []>} : vector<272x8xbf16>, vector<8x4xbf16>, vector<272x4xf32> -> vector<272x4xf32>
    %6 = arith.addf %0, %5 : vector<272x4xf32>
    %c0_7 = arith.constant 0 : index
    %c1 = arith.constant 1 : index
    %c0_8 = arith.constant 0 : index
    %c0_9 = arith.constant 0 : index
    %7 = vector.load %arg1[%c0_7, %c1, %c0_8, %c0_9] : memref<1x4x306x8xbf16, #tpu.memory_space<vmem>>, vector<1x1x272x8xbf16>
    %8 = vector.shape_cast %7 : vector<1x1x272x8xbf16> to vector<272x8xbf16>
    %c1_10 = arith.constant 1 : index
    %c0_11 = arith.constant 0 : index
    %c0_12 = arith.constant 0 : index
    %9 = vector.load %arg2[%c1_10, %c0_11, %c0_12] : memref<9x8x4xbf16, #tpu.memory_space<vmem>>, vector<1x8x4xbf16>
    %10 = vector.shape_cast %9 : vector<1x8x4xbf16> to vector<8x4xbf16>
    %cst_13 = arith.constant dense<0.000000e+00> : vector<272x4xf32>
    %11 = tpu.matmul %8, %10, %cst_13 {dimension_numbers = #tpu.dot_dimension_numbers<[1], [0], [0], [1], [0, 0, 1, 1], [], []>} : vector<272x8xbf16>, vector<8x4xbf16>, vector<272x4xf32> -> vector<272x4xf32>
    %12 = arith.addf %6, %11 : vector<272x4xf32>
    %c0_14 = arith.constant 0 : index
    %c0_15 = arith.constant 0 : index
    %c1_16 = arith.constant 1 : index
    %c0_17 = arith.constant 0 : index
    %13 = vector.load %arg1[%c0_14, %c0_15, %c1_16, %c0_17] : memref<1x4x306x8xbf16, #tpu.memory_space<vmem>>, vector<1x1x272x8xbf16>
    %14 = vector.shape_cast %13 : vector<1x1x272x8xbf16> to vector<272x8xbf16>
    %c2 = arith.constant 2 : index
    %c0_18 = arith.constant 0 : index
    %c0_19 = arith.constant 0 : index
    %15 = vector.load %arg2[%c2, %c0_18, %c0_19] : memref<9x8x4xbf16, #tpu.memory_space<vmem>>, vector<1x8x4xbf16>
    %16 = vector.shape_cast %15 : vector<1x8x4xbf16> to vector<8x4xbf16>
    %cst_20 = arith.constant dense<0.000000e+00> : vector<272x4xf32>
    %17 = tpu.matmul %14, %16, %cst_20 {dimension_numbers = #tpu.dot_dimension_numbers<[1], [0], [0], [1], [0, 0, 1, 1], [], []>} : vector<272x8xbf16>, vector<8x4xbf16>, vector<272x4xf32> -> vector<272x4xf32>
    %18 = arith.addf %12, %17 : vector<272x4xf32>
    %c0_21 = arith.constant 0 : index
    %c2_22 = arith.constant 2 : index
    %c0_23 = arith.constant 0 : index
    %c0_24 = arith.constant 0 : index
    %19 = vector.load %arg1[%c0_21, %c2_22, %c0_23, %c0_24] : memref<1x4x306x8xbf16, #tpu.memory_space<vmem>>, vector<1x1x272x8xbf16>
    %20 = vector.shape_cast %19 : vector<1x1x272x8xbf16> to vector<272x8xbf16>
    %c3 = arith.constant 3 : index
    %c0_25 = arith.constant 0 : index
    %c0_26 = arith.constant 0 : index
    %21 = vector.load %arg2[%c3, %c0_25, %c0_26] : memref<9x8x4xbf16, #tpu.memory_space<vmem>>, vector<1x8x4xbf16>
    %22 = vector.shape_cast %21 : vector<1x8x4xbf16> to vector<8x4xbf16>
    %cst_27 = arith.constant dense<0.000000e+00> : vector<272x4xf32>
    %23 = tpu.matmul %20, %22, %cst_27 {dimension_numbers = #tpu.dot_dimension_numbers<[1], [0], [0], [1], [0, 0, 1, 1], [], []>} : vector<272x8xbf16>, vector<8x4xbf16>, vector<272x4xf32> -> vector<272x4xf32>
    %24 = arith.addf %18, %23 : vector<272x4xf32>
    %c0_28 = arith.constant 0 : index
    %c3_29 = arith.constant 3 : index
    %c0_30 = arith.constant 0 : index
    %c0_31 = arith.constant 0 : index
    %25 = vector.load %arg1[%c0_28, %c3_29, %c0_30, %c0_31] : memref<1x4x306x8xbf16, #tpu.memory_space<vmem>>, vector<1x1x272x8xbf16>
    %26 = vector.shape_cast %25 : vector<1x1x272x8xbf16> to vector<272x8xbf16>
    %c4 = arith.constant 4 : index
    %c0_32 = arith.constant 0 : index
    %c0_33 = arith.constant 0 : index
    %27 = vector.load %arg2[%c4, %c0_32, %c0_33] : memref<9x8x4xbf16, #tpu.memory_space<vmem>>, vector<1x8x4xbf16>
    %28 = vector.shape_cast %27 : vector<1x8x4xbf16> to vector<8x4xbf16>
    %cst_34 = arith.constant dense<0.000000e+00> : vector<272x4xf32>
    %29 = tpu.matmul %26, %28, %cst_34 {dimension_numbers = #tpu.dot_dimension_numbers<[1], [0], [0], [1], [0, 0, 1, 1], [], []>} : vector<272x8xbf16>, vector<8x4xbf16>, vector<272x4xf32> -> vector<272x4xf32>
    %30 = arith.addf %24, %29 : vector<272x4xf32>
    %c0_35 = arith.constant 0 : index
    %c2_36 = arith.constant 2 : index
    %c1_37 = arith.constant 1 : index
    %c0_38 = arith.constant 0 : index
    %31 = vector.load %arg1[%c0_35, %c2_36, %c1_37, %c0_38] : memref<1x4x306x8xbf16, #tpu.memory_space<vmem>>, vector<1x1x272x8xbf16>
    %32 = vector.shape_cast %31 : vector<1x1x272x8xbf16> to vector<272x8xbf16>
    %c5 = arith.constant 5 : index
    %c0_39 = arith.constant 0 : index
    %c0_40 = arith.constant 0 : index
    %33 = vector.load %arg2[%c5, %c0_39, %c0_40] : memref<9x8x4xbf16, #tpu.memory_space<vmem>>, vector<1x8x4xbf16>
    %34 = vector.shape_cast %33 : vector<1x8x4xbf16> to vector<8x4xbf16>
    %cst_41 = arith.constant dense<0.000000e+00> : vector<272x4xf32>
    %35 = tpu.matmul %32, %34, %cst_41 {dimension_numbers = #tpu.dot_dimension_numbers<[1], [0], [0], [1], [0, 0, 1, 1], [], []>} : vector<272x8xbf16>, vector<8x4xbf16>, vector<272x4xf32> -> vector<272x4xf32>
    %36 = arith.addf %30, %35 : vector<272x4xf32>
    %c0_42 = arith.constant 0 : index
    %c0_43 = arith.constant 0 : index
    %c17 = arith.constant 17 : index
    %c0_44 = arith.constant 0 : index
    %37 = vector.load %arg1[%c0_42, %c0_43, %c17, %c0_44] : memref<1x4x306x8xbf16, #tpu.memory_space<vmem>>, vector<1x1x272x8xbf16>
    %38 = vector.shape_cast %37 : vector<1x1x272x8xbf16> to vector<272x8xbf16>
    %c6 = arith.constant 6 : index
    %c0_45 = arith.constant 0 : index
    %c0_46 = arith.constant 0 : index
    %39 = vector.load %arg2[%c6, %c0_45, %c0_46] : memref<9x8x4xbf16, #tpu.memory_space<vmem>>, vector<1x8x4xbf16>
    %40 = vector.shape_cast %39 : vector<1x8x4xbf16> to vector<8x4xbf16>
    %cst_47 = arith.constant dense<0.000000e+00> : vector<272x4xf32>
    %41 = tpu.matmul %38, %40, %cst_47 {dimension_numbers = #tpu.dot_dimension_numbers<[1], [0], [0], [1], [0, 0, 1, 1], [], []>} : vector<272x8xbf16>, vector<8x4xbf16>, vector<272x4xf32> -> vector<272x4xf32>
    %42 = arith.addf %36, %41 : vector<272x4xf32>
    %c0_48 = arith.constant 0 : index
    %c1_49 = arith.constant 1 : index
    %c17_50 = arith.constant 17 : index
    %c0_51 = arith.constant 0 : index
    %43 = vector.load %arg1[%c0_48, %c1_49, %c17_50, %c0_51] : memref<1x4x306x8xbf16, #tpu.memory_space<vmem>>, vector<1x1x272x8xbf16>
    %44 = vector.shape_cast %43 : vector<1x1x272x8xbf16> to vector<272x8xbf16>
    %c7 = arith.constant 7 : index
    %c0_52 = arith.constant 0 : index
    %c0_53 = arith.constant 0 : index
    %45 = vector.load %arg2[%c7, %c0_52, %c0_53] : memref<9x8x4xbf16, #tpu.memory_space<vmem>>, vector<1x8x4xbf16>
    %46 = vector.shape_cast %45 : vector<1x8x4xbf16> to vector<8x4xbf16>
    %cst_54 = arith.constant dense<0.000000e+00> : vector<272x4xf32>
    %47 = tpu.matmul %44, %46, %cst_54 {dimension_numbers = #tpu.dot_dimension_numbers<[1], [0], [0], [1], [0, 0, 1, 1], [], []>} : vector<272x8xbf16>, vector<8x4xbf16>, vector<272x4xf32> -> vector<272x4xf32>
    %48 = arith.addf %42, %47 : vector<272x4xf32>
    %c0_55 = arith.constant 0 : index
    %c0_56 = arith.constant 0 : index
    %c18 = arith.constant 18 : index
    %c0_57 = arith.constant 0 : index
    %49 = vector.load %arg1[%c0_55, %c0_56, %c18, %c0_57] : memref<1x4x306x8xbf16, #tpu.memory_space<vmem>>, vector<1x1x272x8xbf16>
    %50 = vector.shape_cast %49 : vector<1x1x272x8xbf16> to vector<272x8xbf16>
    %c8 = arith.constant 8 : index
    %c0_58 = arith.constant 0 : index
    %c0_59 = arith.constant 0 : index
    %51 = vector.load %arg2[%c8, %c0_58, %c0_59] : memref<9x8x4xbf16, #tpu.memory_space<vmem>>, vector<1x8x4xbf16>
    %52 = vector.shape_cast %51 : vector<1x8x4xbf16> to vector<8x4xbf16>
    %cst_60 = arith.constant dense<0.000000e+00> : vector<272x4xf32>
    %53 = tpu.matmul %50, %52, %cst_60 {dimension_numbers = #tpu.dot_dimension_numbers<[1], [0], [0], [1], [0, 0, 1, 1], [], []>} : vector<272x8xbf16>, vector<8x4xbf16>, vector<272x4xf32> -> vector<272x4xf32>
    %54 = arith.addf %48, %53 : vector<272x4xf32>
    %55 = vector.extract_strided_slice %54 {offsets = [0, 0], sizes = [16, 4], strides = [1, 1]} : vector<272x4xf32> to vector<16x4xf32>
    %56 = arith.truncf %55 : vector<16x4xf32> to vector<16x4xbf16>
    %c0_61 = arith.constant 0 : index
    %c0_62 = arith.constant 0 : index
    %c0_63 = arith.constant 0 : index
    %57 = vector.load %arg3[%c0_61, %c0_62, %c0_63] : memref<1x256x4xbf16, #tpu.memory_space<vmem>>, vector<1x16x4xbf16>
    %58 = vector.shape_cast %57 : vector<1x16x4xbf16> to vector<16x4xbf16>
    %59 = vector.shape_cast %56 : vector<16x4xbf16> to vector<1x16x4xbf16>
    tpu.vector_store %arg3[%c0_61, %c0_62, %c0_63], %59 {strides = array<i32>} : memref<1x256x4xbf16, #tpu.memory_space<vmem>>, vector<1x16x4xbf16>,
    %60 = vector.extract_strided_slice %54 {offsets = [17, 0], sizes = [16, 4], strides = [1, 1]} : vector<272x4xf32> to vector<16x4xf32>
    %61 = arith.truncf %60 : vector<16x4xf32> to vector<16x4xbf16>
    %c0_64 = arith.constant 0 : index
    %c16 = arith.constant 16 : index
    %c0_65 = arith.constant 0 : index
    %62 = vector.load %arg3[%c0_64, %c16, %c0_65] : memref<1x256x4xbf16, #tpu.memory_space<vmem>>, vector<1x16x4xbf16>
    %63 = vector.shape_cast %62 : vector<1x16x4xbf16> to vector<16x4xbf16>
    %64 = vector.shape_cast %61 : vector<16x4xbf16> to vector<1x16x4xbf16>
    tpu.vector_store %arg3[%c0_64, %c16, %c0_65], %64 {strides = array<i32>} : memref<1x256x4xbf16, #tpu.memory_space<vmem>>, vector<1x16x4xbf16>,
    %65 = vector.extract_strided_slice %54 {offsets = [34, 0], sizes = [16, 4], strides = [1, 1]} : vector<272x4xf32> to vector<16x4xf32>
    %66 = arith.truncf %65 : vector<16x4xf32> to vector<16x4xbf16>
    %c0_66 = arith.constant 0 : index
    %c32 = arith.constant 32 : index
    %c0_67 = arith.constant 0 : index
    %67 = vector.load %arg3[%c0_66, %c32, %c0_67] : memref<1x256x4xbf16, #tpu.memory_space<vmem>>, vector<1x16x4xbf16>
    %68 = vector.shape_cast %67 : vector<1x16x4xbf16> to vector<16x4xbf16>
    %69 = vector.shape_cast %66 : vector<16x4xbf16> to vector<1x16x4xbf16>
    tpu.vector_store %arg3[%c0_66, %c32, %c0_67], %69 {strides = array<i32>} : memref<1x256x4xbf16, #tpu.memory_space<vmem>>, vector<1x16x4xbf16>,
    %70 = vector.extract_strided_slice %54 {offsets = [51, 0], sizes = [16, 4], strides = [1, 1]} : vector<272x4xf32> to vector<16x4xf32>
    %71 = arith.truncf %70 : vector<16x4xf32> to vector<16x4xbf16>
    %c0_68 = arith.constant 0 : index
    %c48 = arith.constant 48 : index
    %c0_69 = arith.constant 0 : index
    %72 = vector.load %arg3[%c0_68, %c48, %c0_69] : memref<1x256x4xbf16, #tpu.memory_space<vmem>>, vector<1x16x4xbf16>
    %73 = vector.shape_cast %72 : vector<1x16x4xbf16> to vector<16x4xbf16>
    %74 = vector.shape_cast %71 : vector<16x4xbf16> to vector<1x16x4xbf16>
    tpu.vector_store %arg3[%c0_68, %c48, %c0_69], %74 {strides = array<i32>} : memref<1x256x4xbf16, #tpu.memory_space<vmem>>, vector<1x16x4xbf16>,
    %75 = vector.extract_strided_slice %54 {offsets = [68, 0], sizes = [16, 4], strides = [1, 1]} : vector<272x4xf32> to vector<16x4xf32>
    %76 = arith.truncf %75 : vector<16x4xf32> to vector<16x4xbf16>
    %c0_70 = arith.constant 0 : index
    %c64 = arith.constant 64 : index
    %c0_71 = arith.constant 0 : index
    %77 = vector.load %arg3[%c0_70, %c64, %c0_71] : memref<1x256x4xbf16, #tpu.memory_space<vmem>>, vector<1x16x4xbf16>
    %78 = vector.shape_cast %77 : vector<1x16x4xbf16> to vector<16x4xbf16>
    %79 = vector.shape_cast %76 : vector<16x4xbf16> to vector<1x16x4xbf16>
    tpu.vector_store %arg3[%c0_70, %c64, %c0_71], %79 {strides = array<i32>} : memref<1x256x4xbf16, #tpu.memory_space<vmem>>, vector<1x16x4xbf16>,
    %80 = vector.extract_strided_slice %54 {offsets = [85, 0], sizes = [16, 4], strides = [1, 1]} : vector<272x4xf32> to vector<16x4xf32>
    %81 = arith.truncf %80 : vector<16x4xf32> to vector<16x4xbf16>
    %c0_72 = arith.constant 0 : index
    %c80 = arith.constant 80 : index
    %c0_73 = arith.constant 0 : index
    %82 = vector.load %arg3[%c0_72, %c80, %c0_73] : memref<1x256x4xbf16, #tpu.memory_space<vmem>>, vector<1x16x4xbf16>
    %83 = vector.shape_cast %82 : vector<1x16x4xbf16> to vector<16x4xbf16>
    %84 = vector.shape_cast %81 : vector<16x4xbf16> to vector<1x16x4xbf16>
    tpu.vector_store %arg3[%c0_72, %c80, %c0_73], %84 {strides = array<i32>} : memref<1x256x4xbf16, #tpu.memory_space<vmem>>, vector<1x16x4xbf16>,
    %85 = vector.extract_strided_slice %54 {offsets = [102, 0], sizes = [16, 4], strides = [1, 1]} : vector<272x4xf32> to vector<16x4xf32>
    %86 = arith.truncf %85 : vector<16x4xf32> to vector<16x4xbf16>
    %c0_74 = arith.constant 0 : index
    %c96 = arith.constant 96 : index
    %c0_75 = arith.constant 0 : index
    %87 = vector.load %arg3[%c0_74, %c96, %c0_75] : memref<1x256x4xbf16, #tpu.memory_space<vmem>>, vector<1x16x4xbf16>
    %88 = vector.shape_cast %87 : vector<1x16x4xbf16> to vector<16x4xbf16>
    %89 = vector.shape_cast %86 : vector<16x4xbf16> to vector<1x16x4xbf16>
    tpu.vector_store %arg3[%c0_74, %c96, %c0_75], %89 {strides = array<i32>} : memref<1x256x4xbf16, #tpu.memory_space<vmem>>, vector<1x16x4xbf16>,
    %90 = vector.extract_strided_slice %54 {offsets = [119, 0], sizes = [16, 4], strides = [1, 1]} : vector<272x4xf32> to vector<16x4xf32>
    %91 = arith.truncf %90 : vector<16x4xf32> to vector<16x4xbf16>
    %c0_76 = arith.constant 0 : index
    %c112 = arith.constant 112 : index
    %c0_77 = arith.constant 0 : index
    %92 = vector.load %arg3[%c0_76, %c112, %c0_77] : memref<1x256x4xbf16, #tpu.memory_space<vmem>>, vector<1x16x4xbf16>
    %93 = vector.shape_cast %92 : vector<1x16x4xbf16> to vector<16x4xbf16>
    %94 = vector.shape_cast %91 : vector<16x4xbf16> to vector<1x16x4xbf16>
    tpu.vector_store %arg3[%c0_76, %c112, %c0_77], %94 {strides = array<i32>} : memref<1x256x4xbf16, #tpu.memory_space<vmem>>, vector<1x16x4xbf16>,
    %95 = vector.extract_strided_slice %54 {offsets = [136, 0], sizes = [16, 4], strides = [1, 1]} : vector<272x4xf32> to vector<16x4xf32>
    %96 = arith.truncf %95 : vector<16x4xf32> to vector<16x4xbf16>
    %c0_78 = arith.constant 0 : index
    %c128 = arith.constant 128 : index
    %c0_79 = arith.constant 0 : index
    %97 = vector.load %arg3[%c0_78, %c128, %c0_79] : memref<1x256x4xbf16, #tpu.memory_space<vmem>>, vector<1x16x4xbf16>
    %98 = vector.shape_cast %97 : vector<1x16x4xbf16> to vector<16x4xbf16>
    %99 = vector.shape_cast %96 : vector<16x4xbf16> to vector<1x16x4xbf16>
    tpu.vector_store %arg3[%c0_78, %c128, %c0_79], %99 {strides = array<i32>} : memref<1x256x4xbf16, #tpu.memory_space<vmem>>, vector<1x16x4xbf16>,
    %100 = vector.extract_strided_slice %54 {offsets = [153, 0], sizes = [16, 4], strides = [1, 1]} : vector<272x4xf32> to vector<16x4xf32>
    %101 = arith.truncf %100 : vector<16x4xf32> to vector<16x4xbf16>
    %c0_80 = arith.constant 0 : index
    %c144 = arith.constant 144 : index
    %c0_81 = arith.constant 0 : index
    %102 = vector.load %arg3[%c0_80, %c144, %c0_81] : memref<1x256x4xbf16, #tpu.memory_space<vmem>>, vector<1x16x4xbf16>
    %103 = vector.shape_cast %102 : vector<1x16x4xbf16> to vector<16x4xbf16>
    %104 = vector.shape_cast %101 : vector<16x4xbf16> to vector<1x16x4xbf16>
    tpu.vector_store %arg3[%c0_80, %c144, %c0_81], %104 {strides = array<i32>} : memref<1x256x4xbf16, #tpu.memory_space<vmem>>, vector<1x16x4xbf16>,
    %105 = vector.extract_strided_slice %54 {offsets = [170, 0], sizes = [16, 4], strides = [1, 1]} : vector<272x4xf32> to vector<16x4xf32>
    %106 = arith.truncf %105 : vector<16x4xf32> to vector<16x4xbf16>
    %c0_82 = arith.constant 0 : index
    %c160 = arith.constant 160 : index
    %c0_83 = arith.constant 0 : index
    %107 = vector.load %arg3[%c0_82, %c160, %c0_83] : memref<1x256x4xbf16, #tpu.memory_space<vmem>>, vector<1x16x4xbf16>
    %108 = vector.shape_cast %107 : vector<1x16x4xbf16> to vector<16x4xbf16>
    %109 = vector.shape_cast %106 : vector<16x4xbf16> to vector<1x16x4xbf16>
    tpu.vector_store %arg3[%c0_82, %c160, %c0_83], %109 {strides = array<i32>} : memref<1x256x4xbf16, #tpu.memory_space<vmem>>, vector<1x16x4xbf16>,
    %110 = vector.extract_strided_slice %54 {offsets = [187, 0], sizes = [16, 4], strides = [1, 1]} : vector<272x4xf32> to vector<16x4xf32>
    %111 = arith.truncf %110 : vector<16x4xf32> to vector<16x4xbf16>
    %c0_84 = arith.constant 0 : index
    %c176 = arith.constant 176 : index
    %c0_85 = arith.constant 0 : index
    %112 = vector.load %arg3[%c0_84, %c176, %c0_85] : memref<1x256x4xbf16, #tpu.memory_space<vmem>>, vector<1x16x4xbf16>
    %113 = vector.shape_cast %112 : vector<1x16x4xbf16> to vector<16x4xbf16>
    %114 = vector.shape_cast %111 : vector<16x4xbf16> to vector<1x16x4xbf16>
    tpu.vector_store %arg3[%c0_84, %c176, %c0_85], %114 {strides = array<i32>} : memref<1x256x4xbf16, #tpu.memory_space<vmem>>, vector<1x16x4xbf16>,
    %115 = vector.extract_strided_slice %54 {offsets = [204, 0], sizes = [16, 4], strides = [1, 1]} : vector<272x4xf32> to vector<16x4xf32>
    %116 = arith.truncf %115 : vector<16x4xf32> to vector<16x4xbf16>
    %c0_86 = arith.constant 0 : index
    %c192 = arith.constant 192 : index
    %c0_87 = arith.constant 0 : index
    %117 = vector.load %arg3[%c0_86, %c192, %c0_87] : memref<1x256x4xbf16, #tpu.memory_space<vmem>>, vector<1x16x4xbf16>
    %118 = vector.shape_cast %117 : vector<1x16x4xbf16> to vector<16x4xbf16>
    %119 = vector.shape_cast %116 : vector<16x4xbf16> to vector<1x16x4xbf16>
    tpu.vector_store %arg3[%c0_86, %c192, %c0_87], %119 {strides = array<i32>} : memref<1x256x4xbf16, #tpu.memory_space<vmem>>, vector<1x16x4xbf16>,
    %120 = vector.extract_strided_slice %54 {offsets = [221, 0], sizes = [16, 4], strides = [1, 1]} : vector<272x4xf32> to vector<16x4xf32>
    %121 = arith.truncf %120 : vector<16x4xf32> to vector<16x4xbf16>
    %c0_88 = arith.constant 0 : index
    %c208 = arith.constant 208 : index
    %c0_89 = arith.constant 0 : index
    %122 = vector.load %arg3[%c0_88, %c208, %c0_89] : memref<1x256x4xbf16, #tpu.memory_space<vmem>>, vector<1x16x4xbf16>
    %123 = vector.shape_cast %122 : vector<1x16x4xbf16> to vector<16x4xbf16>
    %124 = vector.shape_cast %121 : vector<16x4xbf16> to vector<1x16x4xbf16>
    tpu.vector_store %arg3[%c0_88, %c208, %c0_89], %124 {strides = array<i32>} : memref<1x256x4xbf16, #tpu.memory_space<vmem>>, vector<1x16x4xbf16>,
    %125 = vector.extract_strided_slice %54 {offsets = [238, 0], sizes = [16, 4], strides = [1, 1]} : vector<272x4xf32> to vector<16x4xf32>
    %126 = arith.truncf %125 : vector<16x4xf32> to vector<16x4xbf16>
    %c0_90 = arith.constant 0 : index
    %c224 = arith.constant 224 : index
    %c0_91 = arith.constant 0 : index
    %127 = vector.load %arg3[%c0_90, %c224, %c0_91] : memref<1x256x4xbf16, #tpu.memory_space<vmem>>, vector<1x16x4xbf16>
    %128 = vector.shape_cast %127 : vector<1x16x4xbf16> to vector<16x4xbf16>
    %129 = vector.shape_cast %126 : vector<16x4xbf16> to vector<1x16x4xbf16>
    tpu.vector_store %arg3[%c0_90, %c224, %c0_91], %129 {strides = array<i32>} : memref<1x256x4xbf16, #tpu.memory_space<vmem>>, vector<1x16x4xbf16>,
    %130 = vector.extract_strided_slice %54 {offsets = [255, 0], sizes = [16, 4], strides = [1, 1]} : vector<272x4xf32> to vector<16x4xf32>
    %131 = arith.truncf %130 : vector<16x4xf32> to vector<16x4xbf16>
    %c0_92 = arith.constant 0 : index
    %c240 = arith.constant 240 : index
    %c0_93 = arith.constant 0 : index
    %132 = vector.load %arg3[%c0_92, %c240, %c0_93] : memref<1x256x4xbf16, #tpu.memory_space<vmem>>, vector<1x16x4xbf16>
    %133 = vector.shape_cast %132 : vector<1x16x4xbf16> to vector<16x4xbf16>
    %134 = vector.shape_cast %131 : vector<16x4xbf16> to vector<1x16x4xbf16>
    tpu.vector_store %arg3[%c0_92, %c240, %c0_93], %134 {strides = array<i32>} : memref<1x256x4xbf16, #tpu.memory_space<vmem>>, vector<1x16x4xbf16>,
    return
  }
  func.func @transform_0(%arg0: i32) -> (i32, i32, i32, i32) {
    %c0_i32 = arith.constant 0 : i32
    %c0_i32_0 = arith.constant 0 : i32
    %c0_i32_1 = arith.constant 0 : i32
    %c0_i32_2 = arith.constant 0 : i32
    return %arg0, %c0_i32, %c0_i32_0, %c0_i32_1 : i32, i32, i32, i32
  }
  func.func @transform_1(%arg0: i32) -> (i32, i32, i32) {
    %c0_i32 = arith.constant 0 : i32
    %c0_i32_0 = arith.constant 0 : i32
    %c0_i32_1 = arith.constant 0 : i32
    %c0_i32_2 = arith.constant 0 : i32
    return %c0_i32, %c0_i32_0, %c0_i32_1 : i32, i32, i32
  }
  func.func @transform_2(%arg0: i32) -> (i32, i32, i32) {
    %c0_i32 = arith.constant 0 : i32
    %c0_i32_0 = arith.constant 0 : i32
    %c0_i32_1 = arith.constant 0 : i32
    return %arg0, %c0_i32, %c0_i32_0 : i32, i32, i32
  }
}

</mosaic_0001>

<bundles_post_ra>
// kernel: tpu_custom_call.1
= control target key start
LH: loop header
LB: loop body
LE: loop exit
PB: predicated region body
PF: predicated region fallthrough
CT: control target
= control target key end

     0   :  { %s4811_s9 = smov 0   ;;  %s5918_s0 = inlined_call_operand.vmem [shape: bf16[2,4,306,8], index: 0, kind: input, shape index: {}]   ;;  %s5919_s1 = inlined_call_operand.vmem [shape: bf16[9,8,4], index: 1, kind: input, shape index: {}]   ;;  %s5920_s2 = inlined_call_operand.vmem [shape: bf16[2,256,4], index: 2, kind: output, shape index: {}]  }
   0x1 LB: > { %s3741_s10 = sadd.s32 4294967295, %s4794_s9   ;;  %p3745_p0 = scmp.ge.s32.totalorder %s4794_s9, 1  ;;  %s4794_s9 = sphi %s4811_s9, %s12_s9  }
   0x2   : > { %p112_p1 = scmp.lt.s32.totalorder %s4794_s9, 3 }
   0x4   : > { %p113_p2 = pnand %p3745_p0, %p112_p1 }
   0x6   : > { %116 = sbr.rel (%p113_p2) target bundleno = 783 (0x30f), region = 28 }
   0xb   : > { %v3783_v0 = vld [vmem:[%s5919_s1 + $0x4] sm:$0xf]  ;;  %vm354_vm0 = vcmask 1043456   ;;  %p134_p3 = scmp.lt.s32.totalorder %s3741_s10, 1  ;;  %v3954_v2 = vld [vmem:[%s5919_s1 + $0x8] sm:$0xf] }
   0xc   : > { %v356_v1 = vsel %vm354_vm0, %v3783_v0, 0  ;;  %v179_v3 = vld [vmem:[%s5919_s1] sm:$0xf]  ;;  %v1003_v4 = vsel %vm354_vm0, %v3954_v2, 0  ;;  %v4194_v6 = vld [vmem:[%s5919_s1 + $0x10] sm:$0xf] }
   0xd   : > { %4776 = vmatpush.bf16.msra.mxu1 %v356_v1  ;;  %4777 = vmatpush.bf16.msra.mxu2 %v356_v1  ;;  %s5950_s10 = smov (!%p134_p3, %s3741_s10), 1  ;;  %v589_v5 = vsel %vm354_vm0, %v179_v3, 0  ;;  %v1611_v7 = vsel %vm354_vm0, %v4194_v6, 0  ;;  %vm302_vm1 = vcmask 64512   ;;  %v4074_v15 = vld [vmem:[%s5919_s1 + $0xc] sm:$0xf] }
   0xe   : > { %365 = vmatpush.bf16.msra.mxu0 %v356_v1  ;;  %s4779_s19 = smul.u32 624, %s5950_s10  ;;  %4778 = vmatpush.bf16.msra.mxu3 %v356_v1  ;;  %v1307_v17 = vsel %vm354_vm0, %v4074_v15, 0  ;;  %v4401_v25 = vld [vmem:[%s5919_s1 + $0x18] sm:$0xf]  ;;  %v4518_v27 = vld [vmem:[%s5919_s1 + $0x1c] sm:$0xf] }
   0xf   : > { %v2505_v26 = vsel %vm354_vm0, %v4401_v25, 0  ;;  %v4315_v28 = vld [vmem:[%s5919_s1 + $0x14] sm:$0xf]  ;;  %v2952_v30 = vsel %vm354_vm0, %v4518_v27, 0  ;;  %v4604_v32 = vld [vmem:[%s5919_s1 + $0x20] sm:$0xf] }
  0x10   : > { %s4841_s22 = scalar_lea.vmem %s5918_s0, %s4779_s19  ;;  %v2058_v31 = vsel %vm354_vm0, %v4315_v28, 0  ;;  %v3176_v33 = vsel %vm354_vm0, %v4604_v32, 0  ;;  %vm810_vm2 = vsmask.f32 7424  ;;  %vm3088_vm3 = vcmask 1046528   ;;  %s4632_s5 = sshll.u32 %s5950_s10, 7 }
  0x11   : > { %1012 = vmatpush.bf16.msrb.mxu2 %v1003_v4  ;;  %598 = vmatpush.bf16.msrb.mxu1 %v589_v5  ;;  %v4655_v8 = vld [vmem:[%s4841_s22 + $0xc4] sm:$0xff]  ;;  %v4660_v9 = vld [vmem:[%s4841_s22 + $0xec] sm:$0xff]  ;;  %v4650_v10 = vld [vmem:[%s4841_s22 + $0x9c] sm:$0xff]  ;;  %vm3308_vm4 = vcmask 27648   ;;  %s5507_s8 = scalar_lea.vmem %s5920_s2, %s4632_s5  ;;  %vm3314_vm5 = vsmask.f32 3328 }
  0x12   : > { %1620 = vmatpush.bf16.msrb.mxu0 %v1611_v7  ;;  %3857 = vmatmul.msk.bf16.vlgmr.msra.gmra.mxu1 %vm302_vm1, %v4655_v8  ;;  %v4665_v11 = vld [vmem:[%s4841_s22 + $0x114] sm:$0xff]  ;;  %v4656_v12 = vld [vmem:[%s4841_s22 + $0xcc] sm:$0xff]  ;;  %v4651_v14 = vld [vmem:[%s4841_s22 + $0xa4] sm:$0xff]  ;;  %vm3315_vm6 = vsmask.f32 7440  ;;  %vm3350_vm8 = vcmask 1042432  }
  0x13   : > { %3862 = vmatmul.msk.bf16.vlgmr.msra.gmra.mxu2 %vm302_vm1, %v4660_v9  ;;  %3852 = vmatmul.msk.bf16.vlgmr.msra.gmra.mxu0 %vm302_vm1, %v4650_v10  ;;  %v4661_v13 = vld [vmem:[%s4841_s22 + $0xf4] sm:$0xff]  ;;  %v4666_v16 = vld [vmem:[%s4841_s22 + $0x11c] sm:$0xff]  ;;  %v4652_v20 = vld [vmem:[%s4841_s22 + $0xac] sm:$0xff]  ;;  %vm3351_vm9 = vcmask 1046532   ;;  %vm3366_vm11 = vsmask.f32 2304 }
  0x14   : > { %3867 = vmatmul.msk.bf16.vlgmr.msra.gmra.mxu3 %vm302_vm1, %v4665_v11  ;;  %v4657_v18 = vld [vmem:[%s4841_s22 + $0xd4] sm:$0xff]  ;;  %v4662_v19 = vld [vmem:[%s4841_s22 + $0xfc] sm:$0xff]  ;;  %v4663_v23 = vld [vmem:[%s4841_s22 + $0x104] sm:$0xff]  ;;  %vm3367_vm12 = vsmask.f32 6416  ;;  %vm3406_vm14 = vcmask 1041408  }
  0x15   : > { %1316 = vmatpush.bf16.msrb.mxu3 %v1307_v17  ;;  %v4684_v21 = vld [vmem:[%s4841_s22 + $0x138] sm:$0xff]  ;;  %v4685_v29 = vld [vmem:[%s4841_s22 + $0x140] sm:$0xff]  ;;  %2514 = vmatpush.bf16.msra.mxu2 %v2505_v26  ;;  %v4664_v35 = vld [vmem:[%s4841_s22 + $0x10c] sm:$0xff]  ;;  %vm3407_vm15 = vcmask 1045508  }
  0x16   : > { %v4658_v22 = vld [vmem:[%s4841_s22 + $0xdc] sm:$0xff]  ;;  %v4653_v24 = vld [vmem:[%s4841_s22 + $0xb4] sm:$0xff]  ;;  %2067 = vmatpush.bf16.msra.mxu1 %v2058_v31  ;;  %3185 = vmatpush.bf16.msra.mxu0 %v3176_v33  ;;  %v4659_v34 = vld [vmem:[%s4841_s22 + $0xe4] sm:$0xff] }
  0x17   : > { %v4654_v36 = vld [vmem:[%s4841_s22 + $0xbc] sm:$0xff]  ;;  %v4668_v38 = vld [vmem:[%s4841_s22 + $0x8] sm:$0xff]  ;;  %v4701_v48 = vld [vmem:[%s4841_s22 + $0x1d4] sm:$0xff] }
  0x18   : > { %v4667_v37 = vld [vmem:[%s4841_s22] sm:$0xff]  ;;  %v4686_v40 = vld [vmem:[%s4841_s22 + $0x148] sm:$0xff]  ;;  %v819_v43 = vshll.u32 %v4668_v38, 16  ;;  %v4669_v49 = vld [vmem:[%s4841_s22 + $0x10] sm:$0xff]  ;;  %v823_v51 = vshrl.u32 %v4668_v38, 16 }
  0x19   : > { %2961 = vmatpush.bf16.msra.mxu3 %v2952_v30  ;;  %v814_v39 = vshll.u32 %v4667_v37, 16  ;;  %v812_v41 = vshrl.u32 %v4667_v37, 16  ;;  %v4633_v46 = vld [vmem:[%s4841_s22] sm:$0xff]  ;;  %v4687_v50 = vld [vmem:[%s4841_s22 + $0x150] sm:$0xff]  ;;  %v827_v52 = vshll.u32 %v4669_v49, 16  ;;  %v4634_v55 = vld [vmem:[%s4841_s22 + $0x8] sm:$0xff] }
  0x1a   : > { %v821_v45 = vrot.slane %v819_v43, 1  ;;  %v4702_v57 = vld [vmem:[%s4841_s22 + $0x1dc] sm:$0xff]  ;;  %v831_v59 = vshrl.u32 %v4669_v49, 16  ;;  %v4635_v0 = vld [vmem:[%s4841_s22 + $0x10] sm:$0xff]  ;;  %v4703_v2 = vld [vmem:[%s4841_s22 + $0x1e4] sm:$0xff] }
  0x1b   : > { %v816_v42 = vrot.slane %v814_v39, 1  ;;  %v829_v54 = vrot.slane %v827_v52, 1  ;;  %v4670_v58 = vld [vmem:[%s4841_s22 + $0x18] sm:$0xff]  ;;  %v4671_v3 = vld [vmem:[%s4841_s22 + $0x20] sm:$0xff]  ;;  %v4673_v30 = vld [vmem:[%s4841_s22 + $0x30] sm:$0xff] }
  0x1c   : > { %v825_v53 = vor.u32 %v823_v51, %v821_v45  ;;  %v835_v60 = vshll.u32 %v4670_v58, 16  ;;  %v4688_v61 = vld [vmem:[%s4841_s22 + $0x158] sm:$0xff]  ;;  %v839_v4 = vshrl.u32 %v4670_v58, 16  ;;  %v843_v5 = vshll.u32 %v4671_v3, 16  ;;  %v4689_v6 = vld [vmem:[%s4841_s22 + $0x160] sm:$0xff]  ;;  %v4691_v37 = vld [vmem:[%s4841_s22 + $0x170] sm:$0xff] }
  0x1d   : > { %v817_v44 = vor.u32 %v816_v42, %v812_v41  ;;  %v833_v62 = vor.u32 %v831_v59, %v829_v54  ;;  %v4636_v9 = vld [vmem:[%s4841_s22 + $0x18] sm:$0xff]  ;;  %v847_v17 = vshrl.u32 %v4671_v3, 16  ;;  %v4638_v41 = vld [vmem:[%s4841_s22 + $0x28] sm:$0xff]  ;;  %v4639_v58 = vld [vmem:[%s4841_s22 + $0x30] sm:$0xff] }
  0x1e   : > { %v830_v56 = vsel %vm810_vm2, %v825_v53, %v829_v54  ;;  %v837_v63 = vrot.slane %v835_v60, 1  ;;  %v845_v8 = vrot.slane %v843_v5, 1  ;;  %v4705_v27 = vld [vmem:[%s4841_s22 + $0x1f4] sm:$0xff]  ;;  %vm5571_vm7 = vmor %vm3314_vm5, %vm3315_vm6  ;;  %vm3422_vm5 = vsmask.f32 1280 }
  0x1f   : > { %v822_v47 = vsel %vm810_vm2, %v817_v44, %v821_v45  ;;  %v4706_v44 = vld [vmem:[%s4841_s22 + $0x1fc] sm:$0xff]  ;;  %vm5614_vm10 = vmor %vm3350_vm8, %vm3351_vm9  ;;  %vm3423_vm6 = vsmask.f32 5392  ;;  %vm3462_vm9 = vcmask 1040384  }
  0x20   : > { %v838_v1 = vsel %vm810_vm2, %v833_v62, %v837_v63  ;;  %v841_v7 = vor.u32 %v839_v4, %v837_v63  ;;  %v4692_v54 = vld [vmem:[%s4841_s22 + $0x178] sm:$0xff]  ;;  %vm5674_vm13 = vmor %vm3366_vm11, %vm3367_vm12  ;;  %vm3463_vm11 = vcmask 1044484  }
  0x21   : > { %vm5714_vm0 = vmor %vm3406_vm14, %vm3407_vm15  ;;  %vm3479_vm14 = vsmask.f32 4368 }
  0x22   : > { %3858 = vmatmul.msk.bf16.gmra.mxu1 %vm302_vm1, %v4656_v12  ;;  %v846_v11 = vsel %vm810_vm2, %v841_v7, %v845_v8  ;;  %v4704_v12 = vld [vmem:[%s4841_s22 + $0x1ec] sm:$0xff]  ;;  %v4693_v7 = vld [vmem:[%s4841_s22 + $0x180] sm:$0xff]  ;;  %vm5765_vm8 = vmor %vm3422_vm5, %vm3423_vm6 }
  0x23   : > { %3863 = vmatmul.msk.bf16.gmra.mxu2 %vm302_vm1, %v4661_v13  ;;  %3853 = vmatmul.msk.bf16.gmra.mxu0 %vm302_vm1, %v4651_v14  ;;  %v4672_v14 = vld [vmem:[%s4841_s22 + $0x28] sm:$0xff]  ;;  %vm5795_vm12 = vmor %vm3462_vm9, %vm3463_vm11 }
  0x24   : > { %3868 = vmatmul.msk.bf16.gmra.mxu3 %vm302_vm1, %v4666_v16  ;;  %v855_v33 = vshrl.u32 %v4672_v14, 16 }
  0x32   : > { %3859 = vmatmul.msk.bf16.gmra.mxu1 %vm302_vm1, %v4657_v18  ;;  %v851_v18 = vshll.u32 %v4672_v14, 16 }
  0x33   : > { %3864 = vmatmul.msk.bf16.gmra.mxu2 %vm302_vm1, %v4662_v19  ;;  %3854 = vmatmul.msk.bf16.gmra.mxu0 %vm302_vm1, %v4652_v20  ;;  %v4690_v20 = vld [vmem:[%s4841_s22 + $0x168] sm:$0xff] }
  0x34   : > { %4143 = vmatmul.msk.bf16.vlgmr.msrb.gmra.mxu3 %vm302_vm1, %v4684_v21  ;;  %v849_v21 = vor.u32 %v847_v17, %v845_v8 }
  0x42   : > { %3860 = vmatmul.msk.bf16.gmra.mxu1 %vm302_vm1, %v4658_v22  ;;  %v853_v22 = vrot.slane %v851_v18, 1  ;;  %v4708_v18 = vld [vmem:[%s4841_s22 + $0x20c] sm:$0xff] }
  0x43   : > { %3865 = vmatmul.msk.bf16.gmra.mxu2 %vm302_vm1, %v4663_v23  ;;  %3855 = vmatmul.msk.bf16.gmra.mxu0 %vm302_vm1, %v4653_v24  ;;  %v4637_v24 = vld [vmem:[%s4841_s22 + $0x20] sm:$0xff] }
  0x44   : > { %4144 = vmatmul.msk.bf16.gmra.mxu3 %vm302_vm1, %v4685_v29  ;;  %v854_v26 = vsel %vm810_vm2, %v849_v21, %v853_v22  ;;  %v857_v38 = vor.u32 %v855_v33, %v853_v22  ;;  %v4676_v22 = vld [vmem:[%s4841_s22 + $0x48] sm:$0xff] }
  0x52   : > { %3861 = vmatmul.msk.bf16.gmra.mxu1 %vm302_vm1, %v4659_v34  ;;  %v859_v34 = vshll.u32 %v4673_v30, 16 }
  0x53   : > { %3866 = vmatmul.msk.bf16.gmra.mxu2 %vm302_vm1, %v4664_v35  ;;  %3856 = vmatmul.msk.bf16.gmra.mxu0 %vm302_vm1, %v4654_v36 }
  0x54   : > { %4145 = vmatmul.msk.bf16.gmra.mxu3 %vm302_vm1, %v4686_v40  ;;  %v861_v39 = vrot.slane %v859_v34, 1 }
  0x56   : > { %v862_v43 = vsel %vm810_vm2, %v857_v38, %v861_v39 }
  0x62   : > { %3937 = vmatmul.msk.bf16.vlgmr.msrb.gmra.mxu1 %vm302_vm1, %v4633_v46 }
  0x63   : > { %4023 = vmatmul.msk.bf16.vlgmr.msrb.gmra.mxu2 %vm302_vm1, %v822_v47  ;;  %4263 = vmatmul.msk.bf16.vlgmr.msrb.gmra.mxu0 %vm302_vm1, %v4701_v48  ;;  %v4674_v47 = vld [vmem:[%s4841_s22 + $0x38] sm:$0xff] }
  0x64   : > { %4146 = vmatmul.msk.bf16.gmra.mxu3 %vm302_vm1, %v4687_v50  ;;  %v863_v50 = vshrl.u32 %v4673_v30, 16  ;;  %v867_v51 = vshll.u32 %v4674_v47, 16  ;;  %v871_v3 = vshrl.u32 %v4674_v47, 16  ;;  %v883_v30 = vshll.u32 %v4676_v22, 16 }
  0x72   : > { %3938 = vmatmul.msk.bf16.gmra.mxu1 %vm302_vm1, %v4634_v55  ;;  %v865_v55 = vor.u32 %v863_v50, %v861_v39  ;;  %v885_v39 = vrot.slane %v883_v30, 1  ;;  %v4709_v50 = vld [vmem:[%s4841_s22 + $0x214] sm:$0xff] }
  0x73   : > { %4024 = vmatmul.msk.bf16.gmra.mxu2 %vm302_vm1, %v830_v56  ;;  %4264 = vmatmul.msk.bf16.gmra.mxu0 %vm302_vm1, %v4702_v57  ;;  %v869_v56 = vrot.slane %v867_v51, 1 }
  0x74   : > { %4147 = vmatmul.msk.bf16.gmra.mxu3 %vm302_vm1, %v4688_v61  ;;  %v4707_v61 = vld [vmem:[%s4841_s22 + $0x204] sm:$0xff] }
  0x75   : > { %v870_v60 = vsel %vm810_vm2, %v865_v55, %v869_v56  ;;  %v873_v8 = vor.u32 %v871_v3, %v869_v56  ;;  %v4677_v55 = vld [vmem:[%s4841_s22 + $0x50] sm:$0xff] }
  0x76   : > { %v891_v3 = vshll.u32 %v4677_v55, 16 }
  0x82   : > { %3939 = vmatmul.msk.bf16.gmra.mxu1 %vm302_vm1, %v4635_v0  ;;  %v4675_v0 = vld [vmem:[%s4841_s22 + $0x40] sm:$0xff] }
  0x83   : > { %4025 = vmatmul.msk.bf16.gmra.mxu2 %vm302_vm1, %v838_v1  ;;  %4265 = vmatmul.msk.bf16.gmra.mxu0 %vm302_vm1, %v4703_v2  ;;  %v875_v4 = vshll.u32 %v4675_v0, 16 }
  0x84   : > { %4148 = vmatmul.msk.bf16.gmra.mxu3 %vm302_vm1, %v4689_v6 }
  0x8f   : > { %v4933_v10 = vpop.f32.mrf.mxu1 }
  0x90   : > { %v4937_v13 = vpop.f32.mrf.mxu0 }
  0x92   : > { %3940 = vmatmul.msk.bf16.gmra.mxu1 %vm302_vm1, %v4636_v9  ;;  %v877_v9 = vrot.slane %v875_v4, 1 }
  0x93   : > { %4026 = vmatmul.msk.bf16.gmra.mxu2 %vm302_vm1, %v846_v11  ;;  %4266 = vmatmul.msk.bf16.gmra.mxu0 %vm302_vm1, %v4704_v12  ;;  %v4640_v12 = vld [vmem:[%s4841_s22 + $0x38] sm:$0xff] }
  0x94   : > { %4149 = vmatmul.msk.bf16.gmra.mxu3 %vm302_vm1, %v4690_v20  ;;  %v878_v17 = vsel %vm810_vm2, %v873_v8, %v877_v9 }
  0x96   : > { %v4943_v15 = vpop.f32.mrf.mxu2 }
  0x97   : > { %v4945_v16 = vpop.f32.mrf.mxu1  ;;  %v4958_v28 = vpop.f32.mrf.mxu3 }
  0x98   : > { %v4947_v19 = vpop.f32.mrf.mxu0 }
  0x9e   : > { %v4951_v23 = vpop.f32.mrf.mxu2 }
  0x9f   : > { %v4954_v25 = vpop.f32.mrf.mxu1  ;;  %v4970_v35 = vpop.f32.mrf.mxu3 }
  0xa0   : > { %v4960_v29 = vpop.f32.mrf.mxu0 }
  0xa2   : > { %3941 = vmatmul.msk.bf16.gmra.mxu1 %vm302_vm1, %v4637_v24 }
  0xa3   : > { %4027 = vmatmul.msk.bf16.gmra.mxu2 %vm302_vm1, %v854_v26  ;;  %4267 = vmatmul.msk.bf16.gmra.mxu0 %vm302_vm1, %v4705_v27  ;;  %v879_v27 = vshrl.u32 %v4675_v0, 16  ;;  %v887_v0 = vshrl.u32 %v4676_v22, 16 }
  0xa4   : > { %4150 = vmatmul.msk.bf16.gmra.mxu3 %vm302_vm1, %v4691_v37  ;;  %v4694_v37 = vld [vmem:[%s4841_s22 + $0x188] sm:$0xff] }
  0xa5   : > { %v881_v38 = vor.u32 %v879_v27, %v877_v9  ;;  %v4695_v9 = vld [vmem:[%s4841_s22 + $0x190] sm:$0xff] }
  0xa6   : > { %v4966_v31 = vpop.f32.mrf.mxu2 }
  0xa7   : > { %v4968_v32 = vpop.f32.mrf.mxu1  ;;  %v4983_v45 = vpop.f32.mrf.mxu3  ;;  %v886_v47 = vsel %vm810_vm2, %v881_v38, %v885_v39 }
  0xa8   : > { %v4972_v36 = vpop.f32.mrf.mxu0 }
  0xae   : > { %v4976_v40 = vpop.f32.mrf.mxu2 }
  0xaf   : > { %v4979_v42 = vpop.f32.mrf.mxu1  ;;  %v4995_v52 = vpop.f32.mrf.mxu3 }
  0xb0   : > { %v4985_v46 = vpop.f32.mrf.mxu0 }
  0xb2   : > { %3942 = vmatmul.msk.bf16.gmra.mxu1 %vm302_vm1, %v4638_v41 }
  0xb3   : > { %4028 = vmatmul.msk.bf16.gmra.mxu2 %vm302_vm1, %v862_v43  ;;  %4268 = vmatmul.msk.bf16.gmra.mxu0 %vm302_vm1, %v4706_v44  ;;  %v4641_v43 = vld [vmem:[%s4841_s22 + $0x40] sm:$0xff] }
  0xb4   : > { %4151 = vmatmul.msk.bf16.gmra.mxu3 %vm302_vm1, %v4692_v54 }
  0xb6   : > { %v4991_v48 = vpop.f32.mrf.mxu2 }
  0xb7   : > { %v4993_v49 = vpop.f32.mrf.mxu1  ;;  %v1318_v62 = vpop.f32.mrf.mxu3 }
  0xb8   : > { %v4997_v53 = vpop.f32.mrf.mxu0 }
  0xbe   : > { %v5001_v57 = vpop.f32.mrf.mxu2 }
  0xbf   : > { %v5004_v59 = vpop.f32.mrf.mxu1  ;;  %v1320_v5 = vpop.f32.mrf.mxu3 }
  0xc0   : > { %v5008_v63 = vpop.f32.mrf.mxu0 }
  0xc2   : > { %3943 = vmatmul.msk.bf16.gmra.mxu1 %vm302_vm1, %v4639_v58 }
  0xc3   : > { %4029 = vmatmul.msk.bf16.gmra.mxu2 %vm302_vm1, %v870_v60  ;;  %4269 = vmatmul.msk.bf16.gmra.mxu0 %vm302_vm1, %v4707_v61 }
  0xc4   : > { %4152 = vmatmul.msk.bf16.gmra.mxu3 %vm302_vm1, %v4693_v7 }
  0xc6   : > { %v5014_v1 = vpop.f32.mrf.mxu2 }
  0xc7   : > { %v5016_v2 = vpop.f32.mrf.mxu1  ;;  %v5029_v20 = vpop.f32.mrf.mxu3 }
  0xc8   : > { %v5018_v6 = vpop.f32.mrf.mxu0 }
  0xce   : > { %v5022_v11 = vpop.f32.mrf.mxu2 }
  0xcf   : > { %v5025_v14 = vpop.f32.mrf.mxu1  ;;  %v5041_v33 = vpop.f32.mrf.mxu3 }
  0xd0   : > { %v5031_v21 = vpop.f32.mrf.mxu0 }
  0xd2   : > { %3944 = vmatmul.msk.bf16.gmra.mxu1 %vm302_vm1, %v4640_v12 }
  0xd3   : > { %4030 = vmatmul.msk.bf16.gmra.mxu2 %vm302_vm1, %v878_v17  ;;  %4270 = vmatmul.msk.bf16.gmra.mxu0 %vm302_vm1, %v4708_v18  ;;  %v889_v17 = vor.u32 %v887_v0, %v885_v39  ;;  %v893_v18 = vrot.slane %v891_v3, 1 }
  0xd4   : > { %4153 = vmatmul.msk.bf16.gmra.mxu3 %vm302_vm1, %v4694_v37  ;;  %v4642_v37 = vld [vmem:[%s4841_s22 + $0x48] sm:$0xff] }
  0xd5   : > { %v894_v38 = vsel %vm810_vm2, %v889_v17, %v893_v18 }
  0xd6   : > { %v5037_v24 = vpop.f32.mrf.mxu2 }
  0xd7   : > { %v5039_v26 = vpop.f32.mrf.mxu1  ;;  %v5052_v51 = vpop.f32.mrf.mxu3 }
  0xd8   : > { %v5043_v34 = vpop.f32.mrf.mxu0 }
  0xde   : > { %v5047_v41 = vpop.f32.mrf.mxu2 }
  0xdf   : > { %v600_v44 = vpop.f32.mrf.mxu1  ;;  %v5059_v4 = vpop.f32.mrf.mxu3 }
  0xe0   : > { %v1622_v54 = vpop.f32.mrf.mxu0  ;;  %v601_v56 = vadd.f32 %v600_v44, %v4937_v13 }
  0xe2   : > { %3945 = vmatmul.msk.bf16.gmra.mxu1 %vm302_vm1, %v4641_v43  ;;  %v4710_v43 = vld [vmem:[%s4841_s22 + $0x21c] sm:$0xff] }
  0xe3   : > { %4031 = vmatmul.msk.bf16.gmra.mxu2 %vm302_vm1, %v886_v47  ;;  %4271 = vmatmul.msk.bf16.gmra.mxu0 %vm302_vm1, %v4709_v50 }
  0xe4   : > { %4154 = vmatmul.msk.bf16.gmra.mxu3 %vm302_vm1, %v4695_v9 }
  0xe6   : > { %v1014_v58 = vpop.f32.mrf.mxu2 }
  0xe7   : > { %v1099_v60 = vadd.f32 %v1014_v58, %v601_v56  ;;  %v602_v61 = vpop.f32.mrf.mxu1  ;;  %v5069_v44 = vpop.f32.mrf.mxu3 }
  0xe8   : > { %v1624_v8 = vpop.f32.mrf.mxu0  ;;  %v603_v13 = vadd.f32 %v602_v61, %v4947_v19  ;;  %v4678_v19 = vld [vmem:[%s4841_s22 + $0x58] sm:$0xff] }
  0xe9   : > { %v1403_v7 = vadd.f32 %v1318_v62, %v1099_v60  ;;  %v895_v60 = vshrl.u32 %v4677_v55, 16  ;;  %v4643_v55 = vld [vmem:[%s4841_s22 + $0x50] sm:$0xff] }
  0xeb   : > { %v5063_v12 = vadd.f32 %v1622_v54, %v1403_v7  ;;  %v4696_v7 = vld [vmem:[%s4841_s22 + $0x198] sm:$0xff]  ;;  %v897_v9 = vor.u32 %v895_v60, %v893_v18 }
  0xee   : > { %v1016_v27 = vpop.f32.mrf.mxu2 }
  0xef   : > { %v1100_v30 = vadd.f32 %v1016_v27, %v603_v13  ;;  %v605_v22 = vpop.f32.mrf.mxu1  ;;  %v5078_v61 = vpop.f32.mrf.mxu3 }
  0xf0   : > { %v1627_v47 = vpop.f32.mrf.mxu0  ;;  %v606_v50 = vadd.f32 %v605_v22, %v4960_v29  ;;  %v4711_v22 = vld [vmem:[%s4841_s22 + $0x224] sm:$0xff] }
  0xf1   : > { %v1404_v62 = vadd.f32 %v1320_v5, %v1100_v30  ;;  %v899_v5 = vshll.u32 %v4678_v19, 16 }
  0xf2   : > { %3946 = vmatmul.msk.bf16.gmra.mxu1 %vm302_vm1, %v4642_v37 }
  0xf3   : > { %4032 = vmatmul.msk.bf16.gmra.mxu2 %vm302_vm1, %v894_v38  ;;  %v5073_v39 = vadd.f32 %v1624_v8, %v1404_v62  ;;  %4272 = vmatmul.msk.bf16.gmra.mxu0 %vm302_vm1, %v4710_v43  ;;  %v901_v29 = vrot.slane %v899_v5, 1 }
  0xf4   : > { %4155 = vmatmul.msk.bf16.gmra.mxu3 %vm302_vm1, %v4696_v7 }
  0xf5   : > { %v902_v37 = vsel %vm810_vm2, %v897_v9, %v901_v29 }
  0xf6   : > { %v1019_v54 = vpop.f32.mrf.mxu2 }
  0xf7   : > { %v1101_v56 = vadd.f32 %v1019_v54, %v606_v50  ;;  %v607_v58 = vpop.f32.mrf.mxu1  ;;  %v5089_v38 = vpop.f32.mrf.mxu3 }
  0xf8   : > { %v1629_v3 = vpop.f32.mrf.mxu0  ;;  %v608_v17 = vadd.f32 %v607_v58, %v4972_v36  ;;  %v4679_v36 = vld [vmem:[%s4841_s22 + $0x60] sm:$0xff] }
  0xf9   : > { %v1405_v0 = vadd.f32 %v5029_v20, %v1101_v56  ;;  %v903_v56 = vshrl.u32 %v4678_v19, 16  ;;  %v4644_v19 = vld [vmem:[%s4841_s22 + $0x58] sm:$0xff] }
  0xfb   : > { %v5083_v8 = vadd.f32 %v1627_v47, %v1405_v0  ;;  %v4697_v0 = vld [vmem:[%s4841_s22 + $0x1a0] sm:$0xff]  ;;  %v905_v7 = vor.u32 %v903_v56, %v901_v29 }
  0xfe   : > { %v1021_v13 = vpop.f32.mrf.mxu2 }
  0xff   : > { %v1102_v27 = vadd.f32 %v1021_v13, %v608_v17  ;;  %v610_v30 = vpop.f32.mrf.mxu1  ;;  %v5099_v58 = vpop.f32.mrf.mxu3 }
 0x100   : > { %v1632_v43 = vpop.f32.mrf.mxu0  ;;  %v611_v62 = vadd.f32 %v610_v30, %v4985_v46  ;;  %v4712_v30 = vld [vmem:[%s4841_s22 + $0x22c] sm:$0xff] }
 0x101   : > { %v1406_v20 = vadd.f32 %v5041_v33, %v1102_v27  ;;  %v907_v33 = vshll.u32 %v4679_v36, 16 }
 0x102   : > { %3947 = vmatmul.msk.bf16.gmra.mxu1 %vm302_vm1, %v4643_v55 }
 0x103   : > { %4033 = vmatmul.msk.bf16.gmra.mxu2 %vm302_vm1, %v902_v37  ;;  %v5094_v18 = vadd.f32 %v1629_v3, %v1406_v20  ;;  %4273 = vmatmul.msk.bf16.gmra.mxu0 %vm302_vm1, %v4711_v22  ;;  %v909_v46 = vrot.slane %v907_v33, 1 }
 0x104   : > { %4156 = vmatmul.msk.bf16.gmra.mxu3 %vm302_vm1, %v4697_v0 }
 0x105   : > { %v910_v55 = vsel %vm810_vm2, %v905_v7, %v909_v46 }
 0x106   : > { %v1024_v47 = vpop.f32.mrf.mxu2 }
 0x107   : > { %v1103_v50 = vadd.f32 %v1024_v47, %v611_v62  ;;  %v612_v54 = vpop.f32.mrf.mxu1  ;;  %v5110_v37 = vpop.f32.mrf.mxu3 }
 0x108   : > { %v1634_v5 = vpop.f32.mrf.mxu0  ;;  %v613_v9 = vadd.f32 %v612_v54, %v4997_v53  ;;  %v4680_v53 = vld [vmem:[%s4841_s22 + $0x68] sm:$0xff] }
 0x109   : > { %v1407_v60 = vadd.f32 %v5052_v51, %v1103_v50  ;;  %v911_v50 = vshrl.u32 %v4679_v36, 16  ;;  %v4645_v36 = vld [vmem:[%s4841_s22 + $0x60] sm:$0xff] }
 0x10b   : > { %v5104_v3 = vadd.f32 %v1632_v43, %v1407_v60  ;;  %v4698_v60 = vld [vmem:[%s4841_s22 + $0x1a8] sm:$0xff]  ;;  %v913_v0 = vor.u32 %v911_v50, %v909_v46 }
 0x10e   : > { %v1026_v17 = vpop.f32.mrf.mxu2 }
 0x10f   : > { %v1104_v13 = vadd.f32 %v1026_v17, %v613_v9  ;;  %v615_v27 = vpop.f32.mrf.mxu1  ;;  %v5120_v54 = vpop.f32.mrf.mxu3 }
 0x110   : > { %v1637_v22 = vpop.f32.mrf.mxu0  ;;  %v616_v20 = vadd.f32 %v615_v27, %v5008_v63  ;;  %v4713_v27 = vld [vmem:[%s4841_s22 + $0x234] sm:$0xff] }
 0x111   : > { %v1408_v51 = vadd.f32 %v5059_v4, %v1104_v13  ;;  %v915_v4 = vshll.u32 %v4680_v53, 16 }
 0x112   : > { %3948 = vmatmul.msk.bf16.gmra.mxu1 %vm302_vm1, %v4644_v19 }
 0x113   : > { %4034 = vmatmul.msk.bf16.gmra.mxu2 %vm302_vm1, %v910_v55  ;;  %v5115_v29 = vadd.f32 %v1634_v5, %v1408_v51  ;;  %4274 = vmatmul.msk.bf16.gmra.mxu0 %vm302_vm1, %v4712_v30  ;;  %v917_v63 = vrot.slane %v915_v4, 1 }
 0x114   : > { %4157 = vmatmul.msk.bf16.gmra.mxu3 %vm302_vm1, %v4698_v60 }
 0x115   : > { %v918_v19 = vsel %vm810_vm2, %v913_v0, %v917_v63 }
 0x116   : > { %v1029_v43 = vpop.f32.mrf.mxu2 }
 0x117   : > { %v1105_v62 = vadd.f32 %v1029_v43, %v616_v20  ;;  %v617_v47 = vpop.f32.mrf.mxu1  ;;  %v5131_v55 = vpop.f32.mrf.mxu3 }
 0x118   : > { %v1639_v33 = vpop.f32.mrf.mxu0  ;;  %v618_v7 = vadd.f32 %v617_v47, %v5018_v6  ;;  %v4681_v6 = vld [vmem:[%s4841_s22 + $0x70] sm:$0xff] }
 0x119   : > { %v1409_v56 = vadd.f32 %v5069_v44, %v1105_v62  ;;  %v919_v62 = vshrl.u32 %v4680_v53, 16  ;;  %v4646_v53 = vld [vmem:[%s4841_s22 + $0x68] sm:$0xff] }
 0x11b   : > { %v5125_v5 = vadd.f32 %v1637_v22, %v1409_v56  ;;  %v4699_v56 = vld [vmem:[%s4841_s22 + $0x1b0] sm:$0xff]  ;;  %v921_v60 = vor.u32 %v919_v62, %v917_v63 }
 0x11e   : > { %v1031_v9 = vpop.f32.mrf.mxu2 }
 0x11f   : > { %v1106_v17 = vadd.f32 %v1031_v9, %v618_v7  ;;  %v620_v13 = vpop.f32.mrf.mxu1  ;;  %v5141_v47 = vpop.f32.mrf.mxu3 }
 0x120   : > { %v1642_v30 = vpop.f32.mrf.mxu0  ;;  %v621_v51 = vadd.f32 %v620_v13, %v5031_v21  ;;  %v4714_v13 = vld [vmem:[%s4841_s22 + $0x23c] sm:$0xff] }
 0x121   : > { %v1410_v44 = vadd.f32 %v5078_v61, %v1106_v17  ;;  %v923_v61 = vshll.u32 %v4681_v6, 16 }
 0x122   : > { %3949 = vmatmul.msk.bf16.gmra.mxu1 %vm302_vm1, %v4645_v36 }
 0x123   : > { %4035 = vmatmul.msk.bf16.gmra.mxu2 %vm302_vm1, %v918_v19  ;;  %v5136_v46 = vadd.f32 %v1639_v33, %v1410_v44  ;;  %4275 = vmatmul.msk.bf16.gmra.mxu0 %vm302_vm1, %v4713_v27  ;;  %v925_v21 = vrot.slane %v923_v61, 1 }
 0x124   : > { %4158 = vmatmul.msk.bf16.gmra.mxu3 %vm302_vm1, %v4699_v56 }
 0x125   : > { %v926_v36 = vsel %vm810_vm2, %v921_v60, %v925_v21 }
 0x126   : > { %v1034_v22 = vpop.f32.mrf.mxu2 }
 0x127   : > { %v1107_v20 = vadd.f32 %v1034_v22, %v621_v51  ;;  %v622_v43 = vpop.f32.mrf.mxu1  ;;  %v5152_v19 = vpop.f32.mrf.mxu3 }
 0x128   : > { %v1644_v4 = vpop.f32.mrf.mxu0  ;;  %v623_v0 = vadd.f32 %v622_v43, %v5043_v34  ;;  %v4682_v34 = vld [vmem:[%s4841_s22 + $0x78] sm:$0xff] }
 0x129   : > { %v1411_v50 = vadd.f32 %v5089_v38, %v1107_v20  ;;  %v927_v20 = vshrl.u32 %v4681_v6, 16 }
 0x12b   : > { %v5146_v33 = vadd.f32 %v1642_v30, %v1411_v50  ;;  %v4700_v50 = vld [vmem:[%s4841_s22 + $0x1b8] sm:$0xff]  ;;  %v929_v56 = vor.u32 %v927_v20, %v925_v21  ;;  %v935_v20 = vshrl.u32 %v4682_v34, 16 }
 0x12e   : > { %v1036_v7 = vpop.f32.mrf.mxu2 }
 0x12f   : > { %v1108_v9 = vadd.f32 %v1036_v7, %v623_v0  ;;  %v625_v17 = vpop.f32.mrf.mxu1  ;;  %v5162_v43 = vpop.f32.mrf.mxu3  ;;  %v4647_v7 = vld [vmem:[%s4841_s22 + $0x70] sm:$0xff] }
 0x130   : > { %v1647_v27 = vpop.f32.mrf.mxu0  ;;  %v626_v44 = vadd.f32 %v625_v17, %v4933_v10 }
 0x131   : > { %v1412_v38 = vadd.f32 %v5099_v58, %v1108_v9  ;;  %v931_v58 = vshll.u32 %v4682_v34, 16 }
 0x132   : > { %3950 = vmatmul.msk.bf16.gmra.mxu1 %vm302_vm1, %v4646_v53 }
 0x133   : > { %4036 = vmatmul.msk.bf16.gmra.mxu2 %vm302_vm1, %v926_v36  ;;  %v5157_v63 = vadd.f32 %v1644_v4, %v1412_v38  ;;  %4276 = vmatmul.msk.bf16.gmra.mxu0 %vm302_vm1, %v4714_v13  ;;  %v933_v10 = vrot.slane %v931_v58, 1  ;;  %v4751_v38 = vld [vmem:[%s4841_s22 + $0xa4] sm:$0xff] }
 0x134   : > { %4159 = vmatmul.msk.bf16.gmra.mxu3 %vm302_vm1, %v4700_v50  ;;  %v2761_v50 = vshrl.u32 %v4751_v38, 16 }
 0x135   : > { %v934_v53 = vsel %vm810_vm2, %v929_v56, %v933_v10 }
 0x136   : > { %v1039_v30 = vpop.f32.mrf.mxu2 }
 0x137   : > { %v1109_v51 = vadd.f32 %v1039_v30, %v626_v44  ;;  %v627_v22 = vpop.f32.mrf.mxu1  ;;  %v5173_v17 = vpop.f32.mrf.mxu3  ;;  %v4752_v30 = vld [vmem:[%s4841_s22 + $0xac] sm:$0xff] }
 0x138   : > { %v1649_v61 = vpop.f32.mrf.mxu0  ;;  %v628_v60 = vadd.f32 %v627_v22, %v4945_v16  ;;  %v4683_v16 = vld [vmem:[%s4841_s22 + $0x80] sm:$0xff]  ;;  %v2768_v56 = vshll.u32 %v4752_v30, 16 }
 0x139   : > { %v1413_v62 = vadd.f32 %v5110_v37, %v1109_v51  ;;  %v4715_v37 = vld [vmem:[%s4841_s22 + $0x244] sm:$0xff]  ;;  %v2763_v51 = vshll.u32 %v4751_v38, 16  ;;  %v939_v58 = vshll.u32 %v4683_v16, 16 }
 0x13b   : > { %v5167_v4 = vadd.f32 %v1647_v27, %v1413_v62 }
 0x13d   : > { %5922 = vst [vmem:[#allocation2_spill] sm:$0xff] %v5167_v4 }
 0x13e   : > { %v1041_v0 = vpop.f32.mrf.mxu2 }
 0x13f   : > { %v1110_v6 = vadd.f32 %v1041_v0, %v628_v60  ;;  %v630_v9 = vpop.f32.mrf.mxu1  ;;  %v5185_v62 = vpop.f32.mrf.mxu3 }
 0x140   : > { %v1652_v13 = vpop.f32.mrf.mxu0  ;;  %v631_v27 = vadd.f32 %v630_v9, %v4954_v25  ;;  %v2770_v25 = vrot.slane %v2768_v56, 1  ;;  %v937_v9 = vor.u32 %v935_v20, %v933_v10  ;;  %v4753_v56 = vld [vmem:[%s4841_s22 + $0xb4] sm:$0xff] }
 0x141   : > { %v1414_v36 = vadd.f32 %v5120_v54, %v1110_v6 }
 0x142   : > { %3951 = vmatmul.msk.bf16.gmra.mxu1 %vm302_vm1, %v4647_v7 }
 0x143   : > { %4037 = vmatmul.msk.bf16.gmra.mxu2 %vm302_vm1, %v934_v53  ;;  %v5178_v21 = vadd.f32 %v1649_v61, %v1414_v36  ;;  %4277 = vmatmul.msk.bf16.gmra.mxu0 %vm302_vm1, %v4715_v37  ;;  %v2765_v61 = vrot.slane %v2763_v51, 1  ;;  %v941_v53 = vrot.slane %v939_v58, 1  ;;  %v719_v36 = vld [vmem:[%s4841_s22 + $0x88] sm:$0x1] }
 0x145   : > { %5923 = vst [vmem:[#allocation3_spill] sm:$0xff] %v5178_v21  ;;  %v2766_v6 = vor.u32 %v2765_v61, %v2761_v50  ;;  %v942_v51 = vsel %vm810_vm2, %v937_v9, %v941_v53  ;;  %v791_v50 = vunpack.c.l.b16 %v719_v36  ;;  %v943_v9 = vshrl.u32 %v4683_v16, 16 }
 0x146   : > { %v1044_v44 = vpop.f32.mrf.mxu2  ;;  %v2776_v36 = vshll.u32 %v4753_v56, 16 }
 0x147   : > { %v1111_v22 = vadd.f32 %v1044_v44, %v631_v27  ;;  %v632_v54 = vpop.f32.mrf.mxu1  ;;  %v2771_v34 = vsel %vm810_vm2, %v2766_v6, %v2770_v25  ;;  %v4648_v44 = vld [vmem:[%s4841_s22 + $0x78] sm:$0xff] }
 0x148   : > { %v1654_v0 = vpop.f32.mrf.mxu0  ;;  %v633_v37 = vadd.f32 %v632_v54, %v4968_v32  ;;  %4587 = vmatmul.msk.bf16.vlgmr.msra.gmra.mxu3 %vm302_vm1, %v2771_v34  ;;  %v809_v54 = vpack.c.b16 %v791_v50, %v791_v50 }
 0x149   : > { %v1415_v60 = vadd.f32 %v5131_v55, %v1111_v22  ;;  %v4716_v22 = vld [vmem:[%s4841_s22 + $0x24c] sm:$0xff] }
 0x14a   : > { %v947_v34 = vshll.u32 %v809_v54, 16 }
 0x14b   : > { %v5188_v7 = vadd.f32 %v1652_v13, %v1415_v60  ;;  %v5197_v13 = vpop.f32.mrf.mxu3 }
 0x14d   : > { %5924 = vst [vmem:[#allocation4_spill] sm:$0xff] %v5188_v7 }
 0x14e   : > { %v1046_v38 = vpop.f32.mrf.mxu2 }
 0x14f   : > { %v1112_v27 = vadd.f32 %v1046_v38, %v633_v37  ;;  %v635_v55 = vpop.f32.mrf.mxu1  ;;  %v2772_v37 = vshrl.u32 %v4752_v30, 16 }
 0x150   : > { %v1657_v20 = vpop.f32.mrf.mxu0  ;;  %v636_v58 = vadd.f32 %v635_v55, %v4979_v42  ;;  %v945_v42 = vor.u32 %v943_v9, %v941_v53  ;;  %v949_v55 = vrot.slane %v947_v34, 1  ;;  %v5232_v34 = vld [vmem:[%s4841_s22 + $0x10] sm:$0xff] }
 0x151   : > { %v1416_v10 = vadd.f32 %v5141_v47, %v1112_v27  ;;  %v2774_v27 = vor.u32 %v2772_v37, %v2770_v25 }
 0x152   : > { %3952 = vmatmul.msk.bf16.gmra.mxu1 %vm302_vm1, %v4648_v44  ;;  %v2778_v44 = vrot.slane %v2776_v36, 1  ;;  %v950_v25 = vsel %vm810_vm2, %v945_v42, %v949_v55  ;;  %v4774_v42 = vld [vmem:[%s4841_s22 + $0x8] sm:$0xe]  ;;  %v4754_v55 = vld [vmem:[%s4841_s22 + $0xbc] sm:$0xff] }
 0x153   : > { %4038 = vmatmul.msk.bf16.gmra.mxu2 %vm302_vm1, %v942_v51  ;;  %v5202_v32 = vadd.f32 %v1654_v0, %v1416_v10  ;;  %4278 = vmatmul.msk.bf16.gmra.mxu0 %vm302_vm1, %v4716_v22  ;;  %v5207_v47 = vpop.f32.mrf.mxu3  ;;  %v4718_v10 = vld [vmem:[%s4841_s22 + $0x138] sm:$0xff] }
 0x154   : > { %v2779_v16 = vsel %vm810_vm2, %v2774_v27, %v2778_v44  ;;  %v4773_v27 = vld [vmem:[%s4841_s22 + $0x8] sm:$0xf0] }
 0x155   : > { %5925 = vst [vmem:[#allocation5_spill] sm:$0xff] %v5202_v32 }
 0x156   : > { %v1049_v61 = vpop.f32.mrf.mxu2 }
 0x157   : > { %v1113_v60 = vadd.f32 %v1049_v61, %v636_v58  ;;  %v637_v6 = vpop.f32.mrf.mxu1 }
 0x158   : > { %v1659_v38 = vpop.f32.mrf.mxu0  ;;  %v638_v22 = vadd.f32 %v637_v6, %v4993_v49  ;;  %4588 = vmatmul.msk.bf16.gmra.mxu3 %vm302_vm1, %v2779_v16  ;;  %v4772_v49 = vld [vmem:[%s4841_s22 + $0x8] sm:$0xff]   ;;  %v1869_v6 = vshll.u32 %v4718_v10, 16 }
 0x159   : > { %v1417_v0 = vadd.f32 %v5152_v19, %v1113_v60  ;;  %v4649_v19 = vld [vmem:[%s4841_s22 + $0x80] sm:$0xff]  ;;  %v2316_v37 = vshll.u32 %v4772_v49, 16 }
 0x15a   : > { %v5226_v60 = vld [vmem:[%s4841_s22 + $0x140] sm:$0xff] }
 0x15b   : > { %v5210_v51 = vadd.f32 %v1657_v20, %v1417_v0  ;;  %v4717_v20 = vld [vmem:[%s4841_s22 + $0x254] sm:$0xff]  ;;  %v5219_v58 = vpop.f32.mrf.mxu3  ;;  %v1867_v0 = vshrl.u32 %v4718_v10, 16  ;;  %v4775_v10 = vor.u32 %v4774_v42, %v4773_v27 }
 0x15d   : > { %5926 = vst [vmem:[#allocation6_spill] sm:$0xff] %v5210_v51  ;;  %v3089_v4 = vrot.slane %v4775_v10, 1 }
 0x15e   : > { %v1051_v30 = vpop.f32.mrf.mxu2 }
 0x15f   : > { %v1114_v50 = vadd.f32 %v1051_v30, %v638_v22  ;;  %v640_v54 = vpop.f32.mrf.mxu1  ;;  %v1871_v22 = vrot.slane %v1869_v6, 1  ;;  %v1874_v30 = vshll.u32 %v5226_v60, 16 }
 0x160   : > { %v1662_v61 = vpop.f32.mrf.mxu0  ;;  %v641_v36 = vadd.f32 %v640_v54, %v5004_v59 }
 0x161   : > { %v1418_v53 = vadd.f32 %v5162_v43, %v1114_v50  ;;  %v2314_v50 = vshrl.u32 %v4772_v49, 16  ;;  %v1872_v7 = vor.u32 %v1871_v22, %v1867_v0  ;;  %v1876_v6 = vrot.slane %v1874_v30, 1 }
 0x162   : > { %3953 = vmatmul.msk.bf16.gmra.mxu1 %vm302_vm1, %v4649_v19 }
 0x163   : > { %4039 = vmatmul.msk.bf16.gmra.mxu2 %vm302_vm1, %v950_v25  ;;  %v5228_v9 = vadd.f32 %v1659_v38, %v1418_v53  ;;  %4279 = vmatmul.msk.bf16.gmra.mxu0 %vm302_vm1, %v4717_v20  ;;  %v2318_v38 = vrot.slane %v2316_v37, 1  ;;  %v2321_v25 = vshll.u32 %v5232_v34, 16  ;;  %v5240_v20 = vpop.f32.mrf.mxu3  ;;  %v2780_v53 = vshrl.u32 %v4753_v56, 16 }
 0x164   : > { %v3090_v56 = vrot.slane %v5232_v34, 1 }
 0x165   : > { %5927 = vst [vmem:[#allocation7_spill] sm:$0xff] %v5228_v9  ;;  %v2784_v9 = vshll.u32 %v4754_v55, 16  ;;  %v2782_v51 = vor.u32 %v2780_v53, %v2778_v44  ;;  %v2323_v49 = vrot.slane %v2321_v25, 1  ;;  %v2325_v25 = vshrl.u32 %v5232_v34, 16 }
 0x166   : > { %v1054_v43 = vpop.f32.mrf.mxu2  ;;  %v3091_v42 = vsel %vm3088_vm3, %v3089_v4, %v3090_v56 }
 0x167   : > { %v1115_v16 = vadd.f32 %v1054_v43, %v641_v36  ;;  %v642_v19 = vpop.f32.mrf.mxu1  ;;  %v2786_v32 = vrot.slane %v2784_v9, 1  ;;  %v2319_v43 = vor.u32 %v2318_v38, %v2314_v50  ;;  %v1877_v9 = vsel %vm810_vm2, %v1872_v7, %v1876_v6  ;;  %v4755_v50 = vld [vmem:[%s4841_s22 + $0xc4] sm:$0xff] }
 0x168   : > { %v1664_v54 = vpop.f32.mrf.mxu0  ;;  %v643_v21 = vadd.f32 %v642_v19, %v5016_v2  ;;  %v2792_v10 = vshll.u32 %v4755_v50, 16 }
 0x169   : > { %v1419_v59 = vadd.f32 %v5173_v17, %v1115_v16  ;;  %v2787_v37 = vsel %vm810_vm2, %v2782_v51, %v2786_v32  ;;  %v2324_v0 = vsel %vm810_vm2, %v2319_v43, %v2323_v49  ;;  %v4720_v16 = vld [vmem:[%s4841_s22 + $0x148] sm:$0xff] }
 0x16a   : > { %4589 = vmatmul.msk.bf16.gmra.mxu3 %vm302_vm1, %v2787_v37  ;;  %v1882_v38 = vshll.u32 %v4720_v16, 16 }
 0x16b   : > { %v5243_v36 = vadd.f32 %v1662_v61, %v1419_v59  ;;  %v5251_v27 = vpop.f32.mrf.mxu3 }
 0x16e   : > { %v1056_v17 = vpop.f32.mrf.mxu2 }
 0x16f   : > { %v1116_v44 = vadd.f32 %v1056_v17, %v643_v21  ;;  %v645_v61 = vpop.f32.mrf.mxu1  ;;  %v5262_v21 = vld [vmem:[%s4841_s22 + $0x18] sm:$0xff] }
 0x170   : > { %v1667_v51 = vpop.f32.mrf.mxu0  ;;  %v646_v7 = vadd.f32 %v645_v61, %v5025_v14  ;;  %v2329_v53 = vshll.u32 %v5262_v21, 16  ;;  %v2794_v14 = vrot.slane %v2792_v10, 1 }
 0x171   : > { %v1420_v2 = vadd.f32 %v5185_v62, %v1116_v44  ;;  %v1878_v62 = vshrl.u32 %v5226_v60, 16  ;;  %v2327_v60 = vor.u32 %v2325_v25, %v2323_v49 }
 0x172   : > { %4384 = vmatmul.msk.bf16.vlgmr.msra.gmra.mxu1 %vm302_vm1, %v1877_v9  ;;  %v1884_v9 = vrot.slane %v1882_v38, 1  ;;  %v5291_v38 = vld [vmem:[%s4841_s22 + $0x20] sm:$0xff] }
 0x173   : > { %4466 = vmatmul.msk.bf16.vlgmr.msra.gmra.mxu2 %vm302_vm1, %v2324_v0  ;;  %v5258_v22 = vadd.f32 %v1664_v54, %v1420_v2  ;;  %4605 = vmatmul.msk.bf16.vlgmr.msra.gmra.mxu0 %vm302_vm1, %v3091_v42  ;;  %v5269_v59 = vpop.f32.mrf.mxu3  ;;  %v2788_v54 = vshrl.u32 %v4754_v55, 16  ;;  %v1880_v44 = vor.u32 %v1878_v62, %v1876_v6  ;;  %v2331_v0 = vrot.slane %v2329_v53, 1  ;;  %v4756_v53 = vld [vmem:[%s4841_s22 + $0xcc] sm:$0xff] }
 0x174   : > { %v3092_v42 = vrot.slane %v5262_v21, 1 }
 0x175   : > { %v2790_v17 = vor.u32 %v2788_v54, %v2786_v32  ;;  %v1885_v6 = vsel %vm810_vm2, %v1880_v44, %v1884_v9 }
 0x176   : > { %v1059_v30 = vpop.f32.mrf.mxu2 }
 0x177   : > { %v1117_v19 = vadd.f32 %v1059_v30, %v646_v7  ;;  %v647_v4 = vpop.f32.mrf.mxu1  ;;  %v2795_v34 = vsel %vm810_vm2, %v2790_v17, %v2794_v14  ;;  %v2337_v17 = vshll.u32 %v5291_v38, 16 }
 0x178   : > { %v1669_v37 = vpop.f32.mrf.mxu0  ;;  %v648_v2 = vadd.f32 %v647_v4, %v5039_v26  ;;  %v3093_v26 = vsel %vm3088_vm3, %v3090_v56, %v3092_v42  ;;  %v2333_v56 = vshrl.u32 %v5262_v21, 16 }
 0x179   : > { %v1421_v43 = vadd.f32 %v5197_v13, %v1117_v19  ;;  %v4721_v19 = vld [vmem:[%s4841_s22 + $0x150] sm:$0xff] }
 0x17a   : > { %4590 = vmatmul.msk.bf16.gmra.mxu3 %vm302_vm1, %v2795_v34  ;;  %v1890_v10 = vshll.u32 %v4721_v19, 16 }
 0x17b   : > { %v5272_v61 = vadd.f32 %v1667_v51, %v1421_v43  ;;  %v2332_v51 = vsel %vm810_vm2, %v2327_v60, %v2331_v0  ;;  %v5280_v49 = vpop.f32.mrf.mxu3  ;;  %v2800_v60 = vshll.u32 %v4756_v53, 16 }
 0x17e   : > { %v1061_v13 = vpop.f32.mrf.mxu2 }
 0x17f   : > { %v1118_v55 = vadd.f32 %v1061_v13, %v648_v2  ;;  %v650_v32 = vpop.f32.mrf.mxu1 }
 0x180   : > { %v1672_v30 = vpop.f32.mrf.mxu0  ;;  %v651_v4 = vadd.f32 %v650_v32, %v4943_v15 }
 0x181   : > { %v1422_v7 = vadd.f32 %v5207_v47, %v1118_v55  ;;  %v1886_v47 = vshrl.u32 %v4720_v16, 16  ;;  %v2802_v55 = vrot.slane %v2800_v60, 1  ;;  %v2335_v16 = vor.u32 %v2333_v56, %v2331_v0 }
 0x182   : > { %4385 = vmatmul.msk.bf16.gmra.mxu1 %vm302_vm1, %v1885_v6  ;;  %v1892_v6 = vrot.slane %v1890_v10, 1  ;;  %v5319_v10 = vld [vmem:[%s4841_s22 + $0x28] sm:$0xff] }
 0x183   : > { %4467 = vmatmul.msk.bf16.gmra.mxu2 %vm302_vm1, %v2332_v51  ;;  %v5287_v62 = vadd.f32 %v1669_v37, %v1422_v7  ;;  %4606 = vmatmul.msk.bf16.gmra.mxu0 %vm302_vm1, %v3093_v26  ;;  %v5297_v44 = vpop.f32.mrf.mxu3  ;;  %v2796_v37 = vshrl.u32 %v4755_v50, 16  ;;  %v1888_v15 = vor.u32 %v1886_v47, %v1884_v9  ;;  %v2339_v51 = vrot.slane %v2337_v17, 1  ;;  %v4757_v17 = vld [vmem:[%s4841_s22 + $0xd4] sm:$0xff] }
 0x184   : > { %v3094_v26 = vrot.slane %v5291_v38, 1 }
 0x185   : > { %v2798_v13 = vor.u32 %v2796_v37, %v2794_v14  ;;  %v1893_v9 = vsel %vm810_vm2, %v1888_v15, %v1892_v6 }
 0x186   : > { %v1064_v25 = vpop.f32.mrf.mxu2 }
 0x187   : > { %v1119_v54 = vadd.f32 %v1064_v25, %v651_v4  ;;  %v652_v43 = vpop.f32.mrf.mxu1  ;;  %v2803_v21 = vsel %vm810_vm2, %v2798_v13, %v2802_v55  ;;  %v2345_v13 = vshll.u32 %v5319_v10, 16 }
 0x188   : > { %v1674_v2 = vpop.f32.mrf.mxu0  ;;  %v653_v7 = vadd.f32 %v652_v43, %v4951_v23  ;;  %v3095_v23 = vsel %vm3088_vm3, %v3092_v42, %v3094_v26  ;;  %v2341_v42 = vshrl.u32 %v5291_v38, 16 }
 0x189   : > { %v1423_v34 = vadd.f32 %v5219_v58, %v1119_v54  ;;  %v4722_v54 = vld [vmem:[%s4841_s22 + $0x158] sm:$0xff] }
 0x18a   : > { %4591 = vmatmul.msk.bf16.gmra.mxu3 %vm302_vm1, %v2803_v21  ;;  %v1898_v60 = vshll.u32 %v4722_v54, 16 }
 0x18b   : > { %v5300_v32 = vadd.f32 %v1672_v30, %v1423_v34  ;;  %v2340_v30 = vsel %vm810_vm2, %v2335_v16, %v2339_v51  ;;  %v5308_v0 = vpop.f32.mrf.mxu3  ;;  %v2808_v16 = vshll.u32 %v4757_v17, 16 }
 0x18e   : > { %v1066_v58 = vpop.f32.mrf.mxu2 }
 0x18f   : > { %v1120_v50 = vadd.f32 %v1066_v58, %v653_v7  ;;  %v655_v14 = vpop.f32.mrf.mxu1 }
 0x190   : > { %v1677_v25 = vpop.f32.mrf.mxu0  ;;  %v656_v43 = vadd.f32 %v655_v14, %v4966_v31 }
 0x191   : > { %v1424_v4 = vadd.f32 %v5240_v20, %v1120_v50  ;;  %v1894_v20 = vshrl.u32 %v4721_v19, 16  ;;  %v2810_v50 = vrot.slane %v2808_v16, 1  ;;  %v2343_v19 = vor.u32 %v2341_v42, %v2339_v51 }
 0x192   : > { %4386 = vmatmul.msk.bf16.gmra.mxu1 %vm302_vm1, %v1893_v9  ;;  %v1900_v9 = vrot.slane %v1898_v60, 1  ;;  %v5347_v60 = vld [vmem:[%s4841_s22 + $0x30] sm:$0xff] }
 0x193   : > { %4468 = vmatmul.msk.bf16.gmra.mxu2 %vm302_vm1, %v2340_v30  ;;  %v5315_v47 = vadd.f32 %v1674_v2, %v1424_v4  ;;  %4607 = vmatmul.msk.bf16.gmra.mxu0 %vm302_vm1, %v3095_v23  ;;  %v5325_v15 = vpop.f32.mrf.mxu3  ;;  %v2804_v2 = vshrl.u32 %v4756_v53, 16  ;;  %v1896_v31 = vor.u32 %v1894_v20, %v1892_v6  ;;  %v2347_v30 = vrot.slane %v2345_v13, 1  ;;  %v4758_v13 = vld [vmem:[%s4841_s22 + $0xdc] sm:$0xff] }
 0x194   : > { %v3096_v23 = vrot.slane %v5319_v10, 1 }
 0x195   : > { %v2806_v58 = vor.u32 %v2804_v2, %v2802_v55  ;;  %v1901_v6 = vsel %vm810_vm2, %v1896_v31, %v1900_v9 }
 0x196   : > { %v1069_v56 = vpop.f32.mrf.mxu2 }
 0x197   : > { %v1121_v37 = vadd.f32 %v1069_v56, %v656_v43  ;;  %v657_v34 = vpop.f32.mrf.mxu1  ;;  %v2811_v38 = vsel %vm810_vm2, %v2806_v58, %v2810_v50  ;;  %v2353_v58 = vshll.u32 %v5347_v60, 16 }
 0x198   : > { %v1679_v7 = vpop.f32.mrf.mxu0  ;;  %v658_v4 = vadd.f32 %v657_v34, %v4976_v40  ;;  %v3097_v40 = vsel %vm3088_vm3, %v3094_v26, %v3096_v23  ;;  %v2349_v26 = vshrl.u32 %v5319_v10, 16 }
 0x199   : > { %v1425_v21 = vadd.f32 %v5251_v27, %v1121_v37  ;;  %v4723_v37 = vld [vmem:[%s4841_s22 + $0x160] sm:$0xff] }
 0x19a   : > { %4592 = vmatmul.msk.bf16.gmra.mxu3 %vm302_vm1, %v2811_v38  ;;  %v1906_v16 = vshll.u32 %v4723_v37, 16 }
 0x19b   : > { %v5328_v14 = vadd.f32 %v1677_v25, %v1425_v21  ;;  %v2348_v25 = vsel %vm810_vm2, %v2343_v19, %v2347_v30  ;;  %v5336_v51 = vpop.f32.mrf.mxu3  ;;  %v2816_v19 = vshll.u32 %v4758_v13, 16 }
 0x19e   : > { %v1071_v27 = vpop.f32.mrf.mxu2 }
 0x19f   : > { %v1122_v53 = vadd.f32 %v1071_v27, %v658_v4  ;;  %v660_v55 = vpop.f32.mrf.mxu1 }
 0x1a0   : > { %v1682_v56 = vpop.f32.mrf.mxu0  ;;  %v661_v34 = vadd.f32 %v660_v55, %v4991_v48 }
 0x1a1   : > { %v1426_v43 = vadd.f32 %v5269_v59, %v1122_v53  ;;  %v1902_v59 = vshrl.u32 %v4722_v54, 16  ;;  %v2818_v53 = vrot.slane %v2816_v19, 1  ;;  %v2351_v54 = vor.u32 %v2349_v26, %v2347_v30 }
 0x1a2   : > { %4387 = vmatmul.msk.bf16.gmra.mxu1 %vm302_vm1, %v1901_v6  ;;  %v1908_v6 = vrot.slane %v1906_v16, 1  ;;  %v5375_v16 = vld [vmem:[%s4841_s22 + $0x38] sm:$0xff] }
 0x1a3   : > { %4469 = vmatmul.msk.bf16.gmra.mxu2 %vm302_vm1, %v2348_v25  ;;  %v5343_v20 = vadd.f32 %v1679_v7, %v1426_v43  ;;  %4608 = vmatmul.msk.bf16.gmra.mxu0 %vm302_vm1, %v3097_v40  ;;  %v5353_v31 = vpop.f32.mrf.mxu3  ;;  %v2812_v7 = vshrl.u32 %v4757_v17, 16  ;;  %v1904_v48 = vor.u32 %v1902_v59, %v1900_v9  ;;  %v2355_v25 = vrot.slane %v2353_v58, 1  ;;  %v4759_v58 = vld [vmem:[%s4841_s22 + $0xe4] sm:$0xff] }
 0x1a4   : > { %v3098_v40 = vrot.slane %v5347_v60, 1 }
 0x1a5   : > { %v2814_v27 = vor.u32 %v2812_v7, %v2810_v50  ;;  %v1909_v9 = vsel %vm810_vm2, %v1904_v48, %v1908_v6 }
 0x1a6   : > { %v1074_v42 = vpop.f32.mrf.mxu2 }
 0x1a7   : > { %v1123_v2 = vadd.f32 %v1074_v42, %v661_v34  ;;  %v662_v21 = vpop.f32.mrf.mxu1  ;;  %v2819_v10 = vsel %vm810_vm2, %v2814_v27, %v2818_v53  ;;  %v2361_v27 = vshll.u32 %v5375_v16, 16 }
 0x1a8   : > { %v1684_v4 = vpop.f32.mrf.mxu0  ;;  %v663_v43 = vadd.f32 %v662_v21, %v5001_v57  ;;  %v3099_v57 = vsel %vm3088_vm3, %v3096_v23, %v3098_v40  ;;  %v2357_v23 = vshrl.u32 %v5347_v60, 16 }
 0x1a9   : > { %v1427_v38 = vadd.f32 %v5280_v49, %v1123_v2  ;;  %v4724_v2 = vld [vmem:[%s4841_s22 + $0x168] sm:$0xff] }
 0x1aa   : > { %4593 = vmatmul.msk.bf16.gmra.mxu3 %vm302_vm1, %v2819_v10  ;;  %v1914_v19 = vshll.u32 %v4724_v2, 16 }
 0x1ab   : > { %v5356_v55 = vadd.f32 %v1682_v56, %v1427_v38  ;;  %v2356_v56 = vsel %vm810_vm2, %v2351_v54, %v2355_v25  ;;  %v5364_v30 = vpop.f32.mrf.mxu3  ;;  %v2824_v54 = vshll.u32 %v4759_v58, 16 }
 0x1ae   : > { %v1076_v49 = vpop.f32.mrf.mxu2 }
 0x1af   : > { %v1124_v17 = vadd.f32 %v1076_v49, %v663_v43  ;;  %v665_v50 = vpop.f32.mrf.mxu1 }
 0x1b0   : > { %v1687_v42 = vpop.f32.mrf.mxu0  ;;  %v666_v21 = vadd.f32 %v665_v50, %v5014_v1 }
 0x1b1   : > { %v1428_v34 = vadd.f32 %v5297_v44, %v1124_v17  ;;  %v1910_v44 = vshrl.u32 %v4723_v37, 16  ;;  %v2826_v17 = vrot.slane %v2824_v54, 1  ;;  %v2359_v37 = vor.u32 %v2357_v23, %v2355_v25 }
 0x1b2   : > { %4388 = vmatmul.msk.bf16.gmra.mxu1 %vm302_vm1, %v1909_v9  ;;  %v1916_v9 = vrot.slane %v1914_v19, 1  ;;  %v5403_v19 = vld [vmem:[%s4841_s22 + $0x40] sm:$0xff] }
 0x1b3   : > { %4470 = vmatmul.msk.bf16.gmra.mxu2 %vm302_vm1, %v2356_v56  ;;  %v5371_v59 = vadd.f32 %v1684_v4, %v1428_v34  ;;  %4609 = vmatmul.msk.bf16.gmra.mxu0 %vm302_vm1, %v3099_v57  ;;  %v5381_v48 = vpop.f32.mrf.mxu3  ;;  %v2820_v4 = vshrl.u32 %v4758_v13, 16  ;;  %v1912_v1 = vor.u32 %v1910_v44, %v1908_v6  ;;  %v2363_v56 = vrot.slane %v2361_v27, 1  ;;  %v4760_v27 = vld [vmem:[%s4841_s22 + $0xec] sm:$0xff] }
 0x1b4   : > { %v3100_v57 = vrot.slane %v5375_v16, 1 }
 0x1b5   : > { %v2822_v49 = vor.u32 %v2820_v4, %v2818_v53  ;;  %v1917_v6 = vsel %vm810_vm2, %v1912_v1, %v1916_v9 }
 0x1b6   : > { %v1079_v26 = vpop.f32.mrf.mxu2 }
 0x1b7   : > { %v1125_v7 = vadd.f32 %v1079_v26, %v666_v21  ;;  %v667_v38 = vpop.f32.mrf.mxu1  ;;  %v2827_v60 = vsel %vm810_vm2, %v2822_v49, %v2826_v17  ;;  %v2369_v49 = vshll.u32 %v5403_v19, 16 }
 0x1b8   : > { %v1689_v43 = vpop.f32.mrf.mxu0  ;;  %v668_v34 = vadd.f32 %v667_v38, %v5022_v11  ;;  %v3101_v11 = vsel %vm3088_vm3, %v3098_v40, %v3100_v57  ;;  %v2365_v40 = vshrl.u32 %v5375_v16, 16 }
 0x1b9   : > { %v1429_v10 = vadd.f32 %v5308_v0, %v1125_v7  ;;  %v4725_v7 = vld [vmem:[%s4841_s22 + $0x170] sm:$0xff] }
 0x1ba   : > { %4594 = vmatmul.msk.bf16.gmra.mxu3 %vm302_vm1, %v2827_v60  ;;  %v1922_v54 = vshll.u32 %v4725_v7, 16 }
 0x1bb   : > { %v5384_v50 = vadd.f32 %v1687_v42, %v1429_v10  ;;  %v2364_v42 = vsel %vm810_vm2, %v2359_v37, %v2363_v56  ;;  %v5392_v25 = vpop.f32.mrf.mxu3  ;;  %v2832_v37 = vshll.u32 %v4760_v27, 16 }
 0x1be   : > { %v1081_v0 = vpop.f32.mrf.mxu2 }
 0x1bf   : > { %v1126_v13 = vadd.f32 %v1081_v0, %v668_v34  ;;  %v670_v53 = vpop.f32.mrf.mxu1 }
 0x1c0   : > { %v1692_v26 = vpop.f32.mrf.mxu0  ;;  %v671_v38 = vadd.f32 %v670_v53, %v5037_v24 }
 0x1c1   : > { %v1430_v21 = vadd.f32 %v5325_v15, %v1126_v13  ;;  %v1918_v15 = vshrl.u32 %v4724_v2, 16  ;;  %v2834_v13 = vrot.slane %v2832_v37, 1  ;;  %v2367_v2 = vor.u32 %v2365_v40, %v2363_v56 }
 0x1c2   : > { %4389 = vmatmul.msk.bf16.gmra.mxu1 %vm302_vm1, %v1917_v6  ;;  %v1924_v6 = vrot.slane %v1922_v54, 1  ;;  %v5431_v54 = vld [vmem:[%s4841_s22 + $0x48] sm:$0xff] }
 0x1c3   : > { %4471 = vmatmul.msk.bf16.gmra.mxu2 %vm302_vm1, %v2364_v42  ;;  %v5399_v44 = vadd.f32 %v1689_v43, %v1430_v21  ;;  %4610 = vmatmul.msk.bf16.gmra.mxu0 %vm302_vm1, %v3101_v11  ;;  %v5409_v1 = vpop.f32.mrf.mxu3  ;;  %v2828_v43 = vshrl.u32 %v4759_v58, 16  ;;  %v1920_v24 = vor.u32 %v1918_v15, %v1916_v9  ;;  %v2371_v42 = vrot.slane %v2369_v49, 1  ;;  %v4761_v49 = vld [vmem:[%s4841_s22 + $0xf4] sm:$0xff] }
 0x1c4   : > { %v3102_v11 = vrot.slane %v5403_v19, 1 }
 0x1c5   : > { %v2830_v0 = vor.u32 %v2828_v43, %v2826_v17  ;;  %v1925_v9 = vsel %vm810_vm2, %v1920_v24, %v1924_v6 }
 0x1c6   : > { %v1084_v23 = vpop.f32.mrf.mxu2 }
 0x1c7   : > { %v1127_v4 = vadd.f32 %v1084_v23, %v671_v38  ;;  %v672_v10 = vpop.f32.mrf.mxu1  ;;  %v2835_v16 = vsel %vm810_vm2, %v2830_v0, %v2834_v13  ;;  %v2377_v0 = vshll.u32 %v5431_v54, 16 }
 0x1c8   : > { %v1694_v34 = vpop.f32.mrf.mxu0  ;;  %v673_v21 = vadd.f32 %v672_v10, %v5047_v41  ;;  %v3103_v41 = vsel %vm3088_vm3, %v3100_v57, %v3102_v11  ;;  %v2373_v57 = vshrl.u32 %v5403_v19, 16 }
 0x1c9   : > { %v1431_v60 = vadd.f32 %v5336_v51, %v1127_v4  ;;  %v4726_v4 = vld [vmem:[%s4841_s22 + $0x178] sm:$0xff] }
 0x1ca   : > { %4595 = vmatmul.msk.bf16.gmra.mxu3 %vm302_vm1, %v2835_v16  ;;  %v1930_v37 = vshll.u32 %v4726_v4, 16 }
 0x1cb   : > { %v5412_v53 = vadd.f32 %v1692_v26, %v1431_v60  ;;  %v2372_v26 = vsel %vm810_vm2, %v2367_v2, %v2371_v42  ;;  %v5420_v56 = vpop.f32.mrf.mxu3  ;;  %v2840_v2 = vshll.u32 %v4761_v49, 16 }
 0x1ce   : > { %v1086_v51 = vpop.f32.mrf.mxu2 }
 0x1cf   : > { %v1128_v58 = vadd.f32 %v1086_v51, %v673_v21  ;;  %v675_v17 = vpop.f32.mrf.mxu1 }
 0x1d0   : > { %v1697_v23 = vpop.f32.mrf.mxu0  ;;  %v676_v10 = vadd.f32 %v675_v17, %v4958_v28 }
 0x1d1   : > { %v1432_v38 = vadd.f32 %v5353_v31, %v1128_v58  ;;  %v1926_v31 = vshrl.u32 %v4725_v7, 16  ;;  %v2842_v58 = vrot.slane %v2840_v2, 1  ;;  %v2375_v7 = vor.u32 %v2373_v57, %v2371_v42 }
 0x1d2   : > { %4390 = vmatmul.msk.bf16.gmra.mxu1 %vm302_vm1, %v1925_v9  ;;  %v1932_v9 = vrot.slane %v1930_v37, 1  ;;  %v5461_v37 = vld [vmem:[%s4841_s22 + $0x50] sm:$0xff] }
 0x1d3   : > { %4472 = vmatmul.msk.bf16.gmra.mxu2 %vm302_vm1, %v2372_v26  ;;  %v5427_v15 = vadd.f32 %v1694_v34, %v1432_v38  ;;  %4611 = vmatmul.msk.bf16.gmra.mxu0 %vm302_vm1, %v3103_v41  ;;  %v5437_v24 = vpop.f32.mrf.mxu3  ;;  %v2836_v34 = vshrl.u32 %v4760_v27, 16  ;;  %v1928_v28 = vor.u32 %v1926_v31, %v1924_v6  ;;  %v2379_v26 = vrot.slane %v2377_v0, 1  ;;  %v4762_v0 = vld [vmem:[%s4841_s22 + $0xfc] sm:$0xff] }
 0x1d4   : > { %v3104_v41 = vrot.slane %v5431_v54, 1 }
 0x1d5   : > { %v2838_v51 = vor.u32 %v2836_v34, %v2834_v13  ;;  %v1933_v6 = vsel %vm810_vm2, %v1928_v28, %v1932_v9  ;;  %v1934_v34 = vshrl.u32 %v4726_v4, 16 }
 0x1d6   : > { %v1089_v40 = vpop.f32.mrf.mxu2 }
 0x1d7   : > { %v1129_v43 = vadd.f32 %v1089_v40, %v676_v10  ;;  %v677_v60 = vpop.f32.mrf.mxu1  ;;  %v2843_v19 = vsel %vm810_vm2, %v2838_v51, %v2842_v58  ;;  %v2385_v51 = vshll.u32 %v5461_v37, 16 }
 0x1d8   : > { %v1699_v21 = vpop.f32.mrf.mxu0  ;;  %v678_v38 = vadd.f32 %v677_v60, %v4970_v35  ;;  %v3105_v35 = vsel %vm3088_vm3, %v3102_v11, %v3104_v41 }
 0x1d9   : > { %v1433_v16 = vadd.f32 %v5364_v30, %v1129_v43  ;;  %v5455_v43 = vld [vmem:[%s4841_s22 + $0x180] sm:$0xff] }
 0x1da   : > { %4596 = vmatmul.msk.bf16.gmra.mxu3 %vm302_vm1, %v2843_v19  ;;  %v1938_v11 = vshll.u32 %v5455_v43, 16 }
 0x1db   : > { %v5440_v17 = vadd.f32 %v1697_v23, %v1433_v16  ;;  %v2380_v23 = vsel %vm810_vm2, %v2375_v7, %v2379_v26  ;;  %v5448_v42 = vpop.f32.mrf.mxu3  ;;  %v2381_v16 = vshrl.u32 %v5431_v54, 16  ;;  %v2848_v7 = vshll.u32 %v4762_v0, 16 }
 0x1dc   : > { %v1940_v4 = vrot.slane %v1938_v11, 1  ;;  %v5492_v11 = vld [vmem:[%s4841_s22 + $0x58] sm:$0xff] }
 0x1de   : > { %v1091_v30 = vpop.f32.mrf.mxu2 }
 0x1df   : > { %v1130_v27 = vadd.f32 %v1091_v30, %v678_v38  ;;  %v680_v13 = vpop.f32.mrf.mxu1 }
 0x1e0   : > { %v1702_v40 = vpop.f32.mrf.mxu0  ;;  %v681_v60 = vadd.f32 %v680_v13, %v4983_v45  ;;  %v2850_v45 = vrot.slane %v2848_v7, 1 }
 0x1e1   : > { %v1434_v10 = vadd.f32 %v5381_v48, %v1130_v27  ;;  %v1936_v27 = vor.u32 %v1934_v34, %v1932_v9 }
 0x1e2   : > { %4391 = vmatmul.msk.bf16.gmra.mxu1 %vm302_vm1, %v1933_v6  ;;  %v2383_v6 = vor.u32 %v2381_v16, %v2379_v26 }
 0x1e3   : > { %4473 = vmatmul.msk.bf16.gmra.mxu2 %vm302_vm1, %v2380_v23  ;;  %v5457_v31 = vadd.f32 %v1699_v21, %v1434_v10  ;;  %4612 = vmatmul.msk.bf16.gmra.mxu0 %vm302_vm1, %v3105_v35  ;;  %v5468_v28 = vpop.f32.mrf.mxu3  ;;  %v2844_v21 = vshrl.u32 %v4761_v49, 16  ;;  %v2387_v23 = vrot.slane %v2385_v51, 1  ;;  %v3106_v35 = vrot.slane %v5461_v37, 1 }
 0x1e4   : > { %v1941_v9 = vsel %vm810_vm2, %v1936_v27, %v1940_v4  ;;  %v2852_v27 = vshrl.u32 %v4762_v0, 16 }
 0x1e5   : > { %v2846_v30 = vor.u32 %v2844_v21, %v2842_v58 }
 0x1e6   : > { %v1094_v57 = vpop.f32.mrf.mxu2 }
 0x1e7   : > { %v1131_v48 = vadd.f32 %v1094_v57, %v681_v60  ;;  %v682_v2 = vpop.f32.mrf.mxu1  ;;  %v2851_v54 = vsel %vm810_vm2, %v2846_v30, %v2850_v45  ;;  %v2393_v30 = vshll.u32 %v5492_v11, 16 }
 0x1e8   : > { %v1704_v38 = vpop.f32.mrf.mxu0  ;;  %v683_v10 = vadd.f32 %v682_v2, %v4995_v52  ;;  %v3107_v52 = vsel %vm3088_vm3, %v3104_v41, %v3106_v35  ;;  %v1942_v41 = vshrl.u32 %v5455_v43, 16 }
 0x1e9   : > { %v1435_v19 = vadd.f32 %v5392_v25, %v1131_v48  ;;  %v5486_v48 = vld [vmem:[%s4841_s22 + $0x188] sm:$0xff] }
 0x1ea   : > { %4597 = vmatmul.msk.bf16.gmra.mxu3 %vm302_vm1, %v2851_v54  ;;  %v1946_v21 = vshll.u32 %v5486_v48, 16  ;;  %v1944_v43 = vor.u32 %v1942_v41, %v1940_v4 }
 0x1eb   : > { %v5471_v13 = vadd.f32 %v1702_v40, %v1435_v19  ;;  %v2388_v40 = vsel %vm810_vm2, %v2383_v6, %v2387_v23  ;;  %v2389_v19 = vshrl.u32 %v5461_v37, 16 }
 0x1ec   : > { %v1948_v37 = vrot.slane %v1946_v21, 1  ;;  %v5524_v21 = vld [vmem:[%s4841_s22 + $0x190] sm:$0xff] }
 0x1ed   : > { %v5479_v26 = vpop.f32.mrf.mxu3 }
 0x1ee   : > { %v1096_v25 = vpop.f32.mrf.mxu2 }
 0x1ef   : > { %v1132_v49 = vadd.f32 %v1096_v25, %v683_v10  ;;  %v2069_v58 = vpop.f32.mrf.mxu1  ;;  %v2854_v10 = vor.u32 %v2852_v27, %v2850_v45  ;;  %v3108_v45 = vrot.slane %v5492_v11, 1 }
 0x1f0   : > { %v3187_v57 = vpop.f32.mrf.mxu0  ;;  %v2154_v2 = vadd.f32 %v2069_v58, %v5063_v12  ;;  %v2391_v58 = vor.u32 %v2389_v19, %v2387_v23  ;;  %v1949_v23 = vsel %vm810_vm2, %v1944_v43, %v1948_v37 }
 0x1f1   : > { %v1436_v60 = vadd.f32 %v5409_v1, %v1132_v49  ;;  %v4763_v1 = vld [vmem:[%s4841_s22 + $0x104] sm:$0xff] }
 0x1f2   : > { %4392 = vmatmul.msk.bf16.gmra.mxu1 %vm302_vm1, %v1941_v9  ;;  %v2856_v6 = vshll.u32 %v4763_v1, 16  ;;  %v2395_v9 = vrot.slane %v2393_v30, 1 }
 0x1f3   : > { %4474 = vmatmul.msk.bf16.gmra.mxu2 %vm302_vm1, %v2388_v40  ;;  %v5488_v34 = vadd.f32 %v1704_v38, %v1436_v60  ;;  %4613 = vmatmul.msk.bf16.gmra.mxu0 %vm302_vm1, %v3107_v52 }
 0x1f4   : > { %v2858_v25 = vrot.slane %v2856_v6, 1  ;;  %v2396_v52 = vsel %vm810_vm2, %v2391_v58, %v2395_v9  ;;  %v5532_v6 = vld [vmem:[%s4841_s22 + $0x10c] sm:$0xff]  ;;  %v2860_v58 = vshrl.u32 %v4763_v1, 16 }
 0x1f5   : > { %v5500_v38 = vpop.f32.mrf.mxu3 }
 0x1f6   : > { %v2516_v16 = vpop.f32.mrf.mxu2  ;;  %v2859_v0 = vsel %vm810_vm2, %v2854_v10, %v2858_v25  ;;  %v2397_v10 = vshrl.u32 %v5492_v11, 16 }
 0x1f7   : > { %v2601_v51 = vadd.f32 %v2516_v16, %v2154_v2  ;;  %v2071_v7 = vpop.f32.mrf.mxu1 }
 0x1f8   : > { %v3189_v12 = vpop.f32.mrf.mxu0 }
 0x1f9   : > { %v3048_v54 = vadd.f32 %v5420_v56, %v2601_v51  ;;  %v2155_v56 = vadd.f32 %v2071_v7, %v5073_v39  ;;  %v3109_v51 = vsel %vm3088_vm3, %v3106_v35, %v3108_v45  ;;  %v5528_v7 = vld [vmem:[%s4841_s22 + $0x60] sm:$0xff]  ;;  %v1950_v35 = vshrl.u32 %v5486_v48, 16 }
 0x1fa   : > { %4598 = vmatmul.msk.bf16.gmra.mxu3 %vm302_vm1, %v2859_v0 }
 0x1fb   : > { %v3272_v49 = vadd.f32 %v3187_v57, %v3048_v54  ;;  %v1954_v54 = vshll.u32 %v5524_v21, 16 }
 0x1fd   : > { %v3306_v40 = vpack.c.bf16 %v3272_v49, %v3272_v49  ;;  %v5517_v2 = vpop.f32.mrf.mxu3  ;;  %v2401_v49 = vshll.u32 %v5528_v7, 16  ;;  %v1956_v48 = vrot.slane %v1954_v54, 1 }
 0x1fe   : > { %v2518_v4 = vpop.f32.mrf.mxu2 }
 0x1ff   : > { %3309 = vst.msk [vmem:[%s5507_s8] sm:$0xf] %vm3308_vm4, %v3306_v40  ;;  %v2602_v60 = vadd.f32 %v2518_v4, %v2155_v56  ;;  %v2074_v57 = vpop.f32.mrf.mxu1  ;;  %v2862_v56 = vor.u32 %v2860_v58, %v2858_v25 }
 0x200   : > { %v3192_v16 = vpop.f32.mrf.mxu0  ;;  %v2156_v30 = vadd.f32 %v2074_v57, %v5083_v8  ;;  %v2864_v8 = vshll.u32 %v5532_v6, 16  ;;  %v1952_v57 = vor.u32 %v1950_v35, %v1948_v37 }
 0x201   : > { %v3049_v39 = vadd.f32 %v5437_v24, %v2602_v60 }
 0x202   : > { %4393 = vmatmul.msk.bf16.gmra.mxu1 %vm302_vm1, %v1949_v23  ;;  %v2866_v4 = vrot.slane %v2864_v8, 1  ;;  %v2399_v23 = vor.u32 %v2397_v10, %v2395_v9  ;;  %v1957_v37 = vsel %vm810_vm2, %v1952_v57, %v1956_v48  ;;  %v5559_v10 = vld [vmem:[%s4841_s22 + $0x198] sm:$0xff] }
 0x203   : > { %v3273_v41 = vadd.f32 %v3189_v12, %v3049_v39  ;;  %4475 = vmatmul.msk.bf16.gmra.mxu2 %vm302_vm1, %v2396_v52  ;;  %4614 = vmatmul.msk.bf16.gmra.mxu0 %vm302_vm1, %v3109_v51  ;;  %v2403_v52 = vrot.slane %v2401_v49, 1  ;;  %v5563_v49 = vld [vmem:[%s4841_s22 + $0x68] sm:$0xff]  ;;  %v1962_v57 = vshll.u32 %v5559_v10, 16 }
 0x204   : > { %v2867_v39 = vsel %vm810_vm2, %v2862_v56, %v2866_v4 }
 0x205   : > { %v3307_v19 = vpack.c.bf16 %v3273_v41, %v3273_v41  ;;  %v5540_v43 = vpop.f32.mrf.mxu3  ;;  %v5921_v41 = vrot.slane %v5528_v7, 1  ;;  %v2404_v9 = vsel %vm810_vm2, %v2399_v23, %v2403_v52  ;;  %v5569_v23 = vld [vmem:[%s4841_s22 + $0x114] sm:$0xff] }
 0x206   : > { %v2521_v27 = vpop.f32.mrf.mxu2 }
 0x207   : > { %3310 = vst.msk [vmem:[%s5507_s8 + $0x4] sm:$0xf] %vm3308_vm4, %v3307_v19  ;;  %v2603_v24 = vadd.f32 %v2521_v27, %v2156_v30  ;;  %v2076_v12 = vpop.f32.mrf.mxu1  ;;  %v3111_v35 = vsel %vm3088_vm3, %v3108_v45, %v5921_v41 }
 0x208   : > { %v3194_v40 = vpop.f32.mrf.mxu0  ;;  %v2157_v51 = vadd.f32 %v2076_v12, %v5094_v18 }
 0x209   : > { %v3050_v0 = vadd.f32 %v5448_v42, %v2603_v24 }
 0x20a   : > { %4599 = vmatmul.msk.bf16.gmra.mxu3 %vm302_vm1, %v2867_v39 }
 0x20b   : > { %v3274_v60 = vadd.f32 %v3192_v16, %v3050_v0  ;;  %v1958_v0 = vshrl.u32 %v5524_v21, 16 }
 0x20d   : > { %v3311_v11 = vpack.c.bf16 %v3274_v60, %v3274_v60  ;;  %v5554_v54 = vpop.f32.mrf.mxu3 }
 0x20e   : > { %v2523_v1 = vpop.f32.mrf.mxu2 }
 0x20f   : > { %v3318_v42 = vshrl.u32 %v3311_v11, 16  ;;  %v3321_v19 = vshll.u32 %v3311_v11, 16  ;;  %v2604_v25 = vadd.f32 %v2523_v1, %v2157_v51  ;;  %v2079_v16 = vpop.f32.mrf.mxu1  ;;  %v2405_v51 = vshrl.u32 %v5528_v7, 16 }
 0x210   : > { %v3197_v18 = vpop.f32.mrf.mxu0  ;;  %v2158_v45 = vadd.f32 %v2079_v16, %v5104_v3  ;;  %v2409_v3 = vshll.u32 %v5563_v49, 16 }
 0x211   : > { %v3320_v30 = vrot.slane %v3318_v42, 4  ;;  %v3323_v27 = vrot.slane %v3321_v19, 5  ;;  %v3051_v24 = vadd.f32 %v5468_v28, %v2604_v25 }
 0x212   : > { %4394 = vmatmul.msk.bf16.gmra.mxu1 %vm302_vm1, %v1957_v37  ;;  %v2868_v37 = vshrl.u32 %v5532_v6, 16  ;;  %v3112_v6 = vrot.slane %v5563_v49, 1 }
 0x213   : > { %v3275_v12 = vadd.f32 %v3194_v40, %v3051_v24  ;;  %4476 = vmatmul.msk.bf16.gmra.mxu2 %vm302_vm1, %v2404_v9  ;;  %4615 = vmatmul.msk.bf16.gmra.mxu0 %vm302_vm1, %v3111_v35  ;;  %v3324_v28 = vor.u32 %v3323_v27, %v3320_v30  ;;  %v2872_v9 = vshll.u32 %v5569_v23, 16  ;;  %v1960_v24 = vor.u32 %v1958_v0, %v1956_v48 }
 0x214   : > { %v1964_v35 = vrot.slane %v1962_v57, 1 }
 0x215   : > { %v3312_v58 = vpack.c.bf16 %v3275_v12, %v3275_v12  ;;  %v3325_v1 = vrot.slane %v3324_v28, 4  ;;  %v5578_v16 = vpop.f32.mrf.mxu3  ;;  %v2407_v12 = vor.u32 %v2405_v51, %v2403_v52  ;;  %v2411_v28 = vrot.slane %v2409_v3, 1 }
 0x216   : > { %v2526_v8 = vpop.f32.mrf.mxu2  ;;  %v1965_v52 = vsel %vm810_vm2, %v1960_v24, %v1964_v35 }
 0x217   : > { %v3327_v40 = vshll.u32 %v3312_v58, 16  ;;  %v3331_v56 = vshrl.u32 %v3312_v58, 16  ;;  %v2605_v60 = vadd.f32 %v2526_v8, %v2158_v45  ;;  %v2081_v11 = vpop.f32.mrf.mxu1  ;;  %v2870_v58 = vor.u32 %v2868_v37, %v2866_v4 }
 0x218   : > { %v3199_v25 = vpop.f32.mrf.mxu0  ;;  %v2874_v45 = vrot.slane %v2872_v9, 1  ;;  %v2412_v4 = vsel %vm810_vm2, %v2407_v12, %v2411_v28  ;;  %v1966_v9 = vshrl.u32 %v5559_v10, 16  ;;  %v2876_v10 = vshrl.u32 %v5569_v23, 16 }
 0x219   : > { %v3329_v42 = vrot.slane %v3327_v40, 5  ;;  %v3333_v21 = vrot.slane %v3331_v56, 4  ;;  %v3052_v19 = vadd.f32 %v5479_v26, %v2605_v60  ;;  %v2159_v40 = vadd.f32 %v2081_v11, %v5115_v29 }
 0x21a   : > { %v2875_v60 = vsel %vm810_vm2, %v2870_v58, %v2874_v45  ;;  %v5930_v11 = vrot.slane %v5528_v7, 1  ;;  %v5611_v7 = vld [vmem:[%s4841_s22 + $0x70] sm:$0xff]  ;;  %v5621_v58 = vld [vmem:[%s4841_s22 + $0x11c] sm:$0xff] }
 0x21b   : > { %v3330_v30 = vsel %vm5571_vm7, %v3325_v1, %v3329_v42  ;;  %v3276_v27 = vadd.f32 %v3197_v18, %v3052_v19  ;;  %v3334_v26 = vor.u32 %v3333_v21, %v3329_v42  ;;  %4600 = vmatmul.msk.bf16.gmra.mxu3 %vm302_vm1, %v2875_v60 }
 0x21c   : > { %3343 = vst.msk [vmem:[%s5507_s8 + $0x8] sm:$0xf] %vm3308_vm4, %v3330_v30  ;;  %v3113_v51 = vsel %vm3088_vm3, %v5930_v11, %v3112_v6  ;;  %v2878_v11 = vor.u32 %v2876_v10, %v2874_v45 }
 0x21d   : > { %v3313_v8 = vpack.c.bf16 %v3276_v27, %v3276_v27  ;;  %v3335_v18 = vrot.slane %v3334_v26, 4  ;;  %v5598_v3 = vpop.f32.mrf.mxu3 }
 0x21e   : > { %v2528_v56 = vpop.f32.mrf.mxu2 }
 0x21f   : > { %v3337_v41 = vshll.u32 %v3313_v8, 16  ;;  %v2606_v1 = vadd.f32 %v2528_v56, %v2159_v40  ;;  %v2084_v48 = vpop.f32.mrf.mxu1  ;;  %v4622_v30 = vrot.slane %v3313_v8, 9  ;;  %v2413_v40 = vshrl.u32 %v5563_v49, 16 }
 0x220   : > { %v3202_v57 = vpop.f32.mrf.mxu0  ;;  %v2160_v19 = vadd.f32 %v2084_v48, %v5125_v5  ;;  %v2417_v5 = vshll.u32 %v5611_v7, 16  ;;  %v2880_v8 = vshll.u32 %v5621_v58, 16 }
 0x221   : > { %v3339_v0 = vrot.slane %v3337_v41, 5  ;;  %v3053_v29 = vadd.f32 %v5500_v38, %v2606_v1  ;;  %v5605_v38 = vld [vmem:[%s4841_s22 + $0x1a0] sm:$0xff] }
 0x222   : > { %4395 = vmatmul.msk.bf16.gmra.mxu1 %vm302_vm1, %v1965_v52  ;;  %v1970_v12 = vshll.u32 %v5605_v38, 16 }
 0x223   : > { %v3340_v42 = vsel %vm5571_vm7, %v3335_v18, %v3339_v0  ;;  %v3277_v21 = vadd.f32 %v3199_v25, %v3053_v29  ;;  %4477 = vmatmul.msk.bf16.gmra.mxu2 %vm302_vm1, %v2412_v4  ;;  %4616 = vmatmul.msk.bf16.gmra.mxu0 %vm302_vm1, %v3113_v51  ;;  %v1968_v4 = vor.u32 %v1966_v9, %v1964_v35  ;;  %v2419_v29 = vrot.slane %v2417_v5, 1 }
 0x224   : > { %3344 = vst.msk [vmem:[%s5507_s8 + $0xc] sm:$0xf] %vm3308_vm4, %v3340_v42  ;;  %v1972_v18 = vrot.slane %v1970_v12, 1  ;;  %v2415_v0 = vor.u32 %v2413_v40, %v2411_v28  ;;  %v2882_v51 = vrot.slane %v2880_v8, 1  ;;  %v5653_v40 = vld [vmem:[%s4841_s22 + $0x1a8] sm:$0xff]  ;;  %v1974_v8 = vshrl.u32 %v5605_v38, 16 }
 0x225   : > { %v3345_v41 = vpack.c.bf16 %v3277_v21, %v3277_v21  ;;  %v5628_v48 = vpop.f32.mrf.mxu3 }
 0x226   : > { %v2531_v37 = vpop.f32.mrf.mxu2  ;;  %v2883_v23 = vsel %vm810_vm2, %v2878_v11, %v2882_v51  ;;  %v1973_v45 = vsel %vm810_vm2, %v1968_v4, %v1972_v18 }
 0x227   : > { %v3355_v27 = vrot.slane %v3345_v41, 5  ;;  %v2607_v24 = vadd.f32 %v2531_v37, %v2160_v19  ;;  %v2086_v26 = vpop.f32.mrf.mxu1 }
 0x228   : > { %v3204_v1 = vpop.f32.mrf.mxu0  ;;  %v2161_v21 = vadd.f32 %v2086_v26, %v5136_v46  ;;  %v2420_v46 = vsel %vm810_vm2, %v2415_v0, %v2419_v29 }
 0x229   : > { %v3356_v56 = vsel %vm5614_vm10, %v4622_v30, %v3355_v27  ;;  %v3054_v60 = vadd.f32 %v5517_v2, %v2607_v24  ;;  %v3114_v2 = vrot.slane %v5611_v7, 1  ;;  %v3357_v41 = vrot.slane %v3355_v27, 4 }
 0x22a   : > { %3362 = vst.msk [vmem:[%s5507_s8 + $0x10] sm:$0xf] %vm3308_vm4, %v3356_v56 }
 0x22b   : > { %v3278_v52 = vadd.f32 %v3202_v57, %v3054_v60  ;;  %4601 = vmatmul.msk.bf16.gmra.mxu3 %vm302_vm1, %v2883_v23  ;;  %v3115_v12 = vsel %vm3088_vm3, %v3112_v6, %v3114_v2 }
 0x22d   : > { %v3346_v42 = vpack.c.bf16 %v3278_v52, %v3278_v52  ;;  %v5648_v26 = vpop.f32.mrf.mxu3  ;;  %v1978_v52 = vshll.u32 %v5653_v40, 16 }
 0x22e   : > { %v2533_v19 = vpop.f32.mrf.mxu2 }
 0x22f   : > { %v3358_v37 = vrot.slane %v3346_v42, 5  ;;  %v3370_v30 = vshrl.u32 %v3346_v42, 16  ;;  %v3373_v57 = vshll.u32 %v3346_v42, 16  ;;  %v2608_v35 = vadd.f32 %v2533_v19, %v2161_v21  ;;  %v2089_v28 = vpop.f32.mrf.mxu1  ;;  %v5665_v42 = vld [vmem:[%s4841_s22 + $0x124] sm:$0xff] }
 0x230   : > { %v3207_v24 = vpop.f32.mrf.mxu0  ;;  %v2162_v6 = vadd.f32 %v2089_v28, %v5146_v33  ;;  %v2884_v28 = vshrl.u32 %v5621_v58, 16 }
 0x231   : > { %v3359_v9 = vsel %vm5614_vm10, %v3357_v41, %v3358_v37  ;;  %v3055_v27 = vadd.f32 %v5540_v43, %v2608_v35  ;;  %v3372_v5 = vrot.slane %v3370_v30, 5  ;;  %v3375_v56 = vrot.slane %v3373_v57, 6  ;;  %v5659_v43 = vld [vmem:[%s4841_s22 + $0x78] sm:$0xff] }
 0x232   : > { %3363 = vst.msk [vmem:[%s5507_s8 + $0x14] sm:$0xf] %vm3308_vm4, %v3359_v9  ;;  %4396 = vmatmul.msk.bf16.gmra.mxu1 %vm302_vm1, %v1973_v45  ;;  %v2421_v41 = vshrl.u32 %v5611_v7, 16  ;;  %v2425_v19 = vshll.u32 %v5659_v43, 16  ;;  %v1976_v35 = vor.u32 %v1974_v8, %v1972_v18  ;;  %v2888_v45 = vshll.u32 %v5665_v42, 16 }
 0x233   : > { %v3279_v60 = vadd.f32 %v3204_v1, %v3055_v27  ;;  %4478 = vmatmul.msk.bf16.gmra.mxu2 %vm302_vm1, %v2420_v46  ;;  %4617 = vmatmul.msk.bf16.gmra.mxu0 %vm302_vm1, %v3115_v12  ;;  %v3376_v1 = vor.u32 %v3375_v56, %v3372_v5  ;;  %v1980_v12 = vrot.slane %v1978_v52, 1  ;;  %v2886_v56 = vor.u32 %v2884_v28, %v2882_v51  ;;  %v4517_v7 = vld [vmem:[%s4841_s22 + $0x12c] sm:$0x1] }
 0x234   : > { %v2427_v5 = vrot.slane %v2425_v19, 1  ;;  %v3116_v18 = vrot.slane %v5659_v43, 1  ;;  %v5697_v19 = vld [vmem:[%s4841_s22 + $0x1b0] sm:$0xff] }
 0x235   : > { %v3364_v49 = vpack.c.bf16 %v3279_v60, %v3279_v60  ;;  %v5670_v57 = vpop.f32.mrf.mxu3  ;;  %v3377_v46 = vrot.slane %v3376_v1, 4  ;;  %v2890_v60 = vrot.slane %v2888_v45, 1  ;;  %v1981_v1 = vsel %vm810_vm2, %v1976_v35, %v1980_v12  ;;  %v5935_v45 = vld [vmem:[#allocation2_spill] sm:$0xff] }
 0x236   : > { %v2536_v10 = vpop.f32.mrf.mxu2 }
 0x237   : > { %v3379_v4 = vshrl.u32 %v3364_v49, 16  ;;  %v3382_v0 = vshll.u32 %v3364_v49, 16  ;;  %v2609_v11 = vadd.f32 %v2536_v10, %v2162_v6  ;;  %v2091_v21 = vpop.f32.mrf.mxu1  ;;  %v2891_v8 = vsel %vm810_vm2, %v2886_v56, %v2890_v60 }
 0x238   : > { %v3209_v30 = vpop.f32.mrf.mxu0  ;;  %v2163_v10 = vadd.f32 %v2091_v21, %v5157_v63  ;;  %v1986_v56 = vshll.u32 %v5697_v19, 16 }
 0x239   : > { %v3381_v23 = vrot.slane %v3379_v4, 5  ;;  %v3384_v33 = vrot.slane %v3382_v0, 6  ;;  %v3056_v37 = vadd.f32 %v5554_v54, %v2609_v11  ;;  %v2423_v54 = vor.u32 %v2421_v41, %v2419_v29 }
 0x23a   : > { %v3117_v41 = vsel %vm3088_vm3, %v3114_v2, %v3116_v18 }
 0x23b   : > { %v3385_v9 = vor.u32 %v3384_v33, %v3381_v23  ;;  %v3280_v27 = vadd.f32 %v3207_v24, %v3056_v37  ;;  %4602 = vmatmul.msk.bf16.gmra.mxu3 %vm302_vm1, %v2891_v8  ;;  %v2428_v4 = vsel %vm810_vm2, %v2423_v54, %v2427_v5  ;;  %v1982_v54 = vshrl.u32 %v5653_v40, 16 }
 0x23c   : > { %v2892_v40 = vshrl.u32 %v5665_v42, 16 }
 0x23d   : > { %v3386_v49 = vsel %vm5674_vm13, %v3377_v46, %v3385_v9  ;;  %v3365_v6 = vpack.c.bf16 %v3280_v27, %v3280_v27  ;;  %v5699_v23 = vpop.f32.mrf.mxu3  ;;  %v3387_v33 = vrot.slane %v3385_v9, 4  ;;  %v2741_v27 = vunpack.c.l.b16 %v4517_v7 }
 0x23e   : > { %3399 = vst.msk [vmem:[%s5507_s8 + $0x18] sm:$0xf] %vm3308_vm4, %v3386_v49  ;;  %v2538_v58 = vpop.f32.mrf.mxu2 }
 0x23f   : > { %v3389_v24 = vshrl.u32 %v3365_v6, 16  ;;  %v3392_v52 = vshll.u32 %v3365_v6, 16  ;;  %v2610_v29 = vadd.f32 %v2538_v58, %v2163_v10  ;;  %v2094_v51 = vpop.f32.mrf.mxu1  ;;  %v4623_v49 = vrot.slane %v3365_v6, 10 }
 0x240   : > { %v3212_v21 = vpop.f32.mrf.mxu0  ;;  %v2164_v46 = vadd.f32 %v2094_v51, %v5935_v45  ;;  %v2759_v8 = vpack.c.b16 %v2741_v27, %v2741_v27 }
 0x241   : > { %v3391_v63 = vrot.slane %v3389_v24, 5  ;;  %v3394_v0 = vrot.slane %v3392_v52, 6  ;;  %v3057_v11 = vadd.f32 %v5578_v16, %v2610_v29  ;;  %v5705_v16 = vld [vmem:[%s4841_s22 + $0x80] sm:$0xff]  ;;  %v2429_v52 = vshrl.u32 %v5659_v43, 16 }
 0x242   : > { %4397 = vmatmul.msk.bf16.gmra.mxu1 %vm302_vm1, %v1981_v1  ;;  %v2433_v29 = vshll.u32 %v5705_v16, 16 }
 0x243   : > { %v3395_v37 = vor.u32 %v3394_v0, %v3391_v63  ;;  %v3281_v35 = vadd.f32 %v3209_v30, %v3057_v11  ;;  %4479 = vmatmul.msk.bf16.gmra.mxu2 %vm302_vm1, %v2428_v4  ;;  %4618 = vmatmul.msk.bf16.gmra.mxu0 %vm302_vm1, %v3117_v41  ;;  %v2896_v63 = vshll.u32 %v2759_v8, 16  ;;  %v1984_v0 = vor.u32 %v1982_v54, %v1980_v12 }
 0x244   : > { %v1988_v11 = vrot.slane %v1986_v56, 1  ;;  %v2431_v41 = vor.u32 %v2429_v52, %v2427_v5 }
 0x245   : > { %v3396_v2 = vsel %vm5674_vm13, %v3387_v33, %v3395_v37  ;;  %v3401_v28 = vpack.c.bf16 %v3281_v35, %v3281_v35  ;;  %v2435_v33 = vrot.slane %v2433_v29, 1  ;;  %v5728_v37 = vpop.f32.mrf.mxu3  ;;  %v2894_v35 = vor.u32 %v2892_v40, %v2890_v60  ;;  %v5939_v40 = vld [vmem:[#allocation4_spill] sm:$0xff] }
 0x246   : > { %3400 = vst.msk [vmem:[%s5507_s8 + $0x1c] sm:$0xf] %vm3308_vm4, %v3396_v2  ;;  %v2541_v9 = vpop.f32.mrf.mxu2  ;;  %v2898_v7 = vrot.slane %v2896_v63, 1  ;;  %v1989_v60 = vsel %vm810_vm2, %v1984_v0, %v1988_v11 }
 0x247   : > { %v3411_v10 = vrot.slane %v3401_v28, 6  ;;  %v2611_v58 = vadd.f32 %v2541_v9, %v2164_v46  ;;  %v2096_v24 = vpop.f32.mrf.mxu1  ;;  %v5938_v28 = vld [vmem:[#allocation3_spill] sm:$0xff]  ;;  %v2436_v56 = vsel %vm810_vm2, %v2431_v41, %v2435_v33 }
 0x248   : > { %v3214_v4 = vpop.f32.mrf.mxu0  ;;  %v2165_v45 = vadd.f32 %v2096_v24, %v5938_v28  ;;  %v2899_v42 = vsel %vm810_vm2, %v2894_v35, %v2898_v7  ;;  %v1990_v7 = vshrl.u32 %v5697_v19, 16  ;;  %v2437_v28 = vshrl.u32 %v5705_v16, 16 }
 0x249   : > { %v3412_v51 = vsel %vm5714_vm0, %v4623_v49, %v3411_v10  ;;  %v3058_v1 = vadd.f32 %v5598_v3, %v2611_v58  ;;  %v3118_v3 = vrot.slane %v5705_v16, 1  ;;  %v3413_v46 = vrot.slane %v3411_v10, 4  ;;  %v5943_v16 = vld [vmem:[#allocation6_spill] sm:$0xff] }
 0x24a   : > { %3418 = vst.msk [vmem:[%s5507_s8 + $0x20] sm:$0xf] %vm3308_vm4, %v3412_v51  ;;  %v5750_v51 = vld [vmem:[%s4841_s22 + $0x1b8] sm:$0xff] }
 0x24b   : > { %v3282_v6 = vadd.f32 %v3212_v21, %v3058_v1  ;;  %4603 = vmatmul.msk.bf16.gmra.mxu3 %vm302_vm1, %v2899_v42  ;;  %v3119_v8 = vsel %vm3088_vm3, %v3116_v18, %v3118_v3 }
 0x24d   : > { %v3402_v2 = vpack.c.bf16 %v3282_v6, %v3282_v6  ;;  %v5756_v63 = vpop.f32.mrf.mxu3 }
 0x24e   : > { %v2543_v27 = vpop.f32.mrf.mxu2 }
 0x24f   : > { %v3414_v9 = vrot.slane %v3402_v2, 6  ;;  %v3426_v21 = vshrl.u32 %v3402_v2, 16  ;;  %v3429_v12 = vshll.u32 %v3402_v2, 16  ;;  %v2612_v54 = vadd.f32 %v2543_v27, %v2165_v45  ;;  %v2099_v5 = vpop.f32.mrf.mxu1 }
 0x250   : > { %v3217_v58 = vpop.f32.mrf.mxu0  ;;  %v2166_v43 = vadd.f32 %v2099_v5, %v5939_v40  ;;  %v1994_v2 = vshll.u32 %v5750_v51, 16  ;;  %v1992_v5 = vor.u32 %v1990_v7, %v1988_v11 }
 0x251   : > { %v3415_v49 = vsel %vm5714_vm0, %v3413_v46, %v3414_v9  ;;  %v3059_v10 = vadd.f32 %v5628_v48, %v2612_v54  ;;  %v3428_v24 = vrot.slane %v3426_v21, 6  ;;  %v3431_v52 = vrot.slane %v3429_v12, 7  ;;  %v5753_v48 = vld [vmem:[%s4841_s22 + $0x88] sm:$0xff] }
 0x252   : > { %3419 = vst.msk [vmem:[%s5507_s8 + $0x24] sm:$0xf] %vm3308_vm4, %v3415_v49  ;;  %4398 = vmatmul.msk.bf16.gmra.mxu1 %vm302_vm1, %v1989_v60  ;;  %v2441_v45 = vshll.u32 %v5753_v48, 16  ;;  %v1996_v60 = vrot.slane %v1994_v2, 1 }
 0x253   : > { %v3283_v29 = vadd.f32 %v3214_v4, %v3059_v10  ;;  %4480 = vmatmul.msk.bf16.gmra.mxu2 %vm302_vm1, %v2436_v56  ;;  %4619 = vmatmul.msk.bf16.gmra.mxu0 %vm302_vm1, %v3119_v8  ;;  %v3432_v6 = vor.u32 %v3431_v52, %v3428_v24  ;;  %v2439_v56 = vor.u32 %v2437_v28, %v2435_v33  ;;  %v3120_v52 = vrot.slane %v5753_v48, 1 }
 0x254   : > { %v2443_v49 = vrot.slane %v2441_v45, 1  ;;  %v1997_v33 = vsel %vm810_vm2, %v1992_v5, %v1996_v60 }
 0x255   : > { %v3420_v1 = vpack.c.bf16 %v3283_v29, %v3283_v29  ;;  %v3433_v19 = vrot.slane %v3432_v6, 4  ;;  %v4314_v29 = vld [vmem:[%s4841_s22 + $0x1c0] sm:$0x1]  ;;  %v3121_v45 = vsel %vm3088_vm3, %v3118_v3, %v3120_v52 }
 0x256   : > { %v2546_v18 = vpop.f32.mrf.mxu2  ;;  %v2444_v6 = vsel %vm810_vm2, %v2439_v56, %v2443_v49 }
 0x257   : > { %v3435_v4 = vshrl.u32 %v3420_v1, 16  ;;  %v3438_v0 = vshll.u32 %v3420_v1, 16  ;;  %v2613_v41 = vadd.f32 %v2546_v18, %v2166_v43  ;;  %v2101_v35 = vpop.f32.mrf.mxu1  ;;  %v2222_v1 = vld [vmem:[%s4841_s22 + $0x90] sm:$0x1] }
 0x258   : > { %v3219_v9 = vpop.f32.mrf.mxu0 }
 0x259   : > { %v3437_v46 = vrot.slane %v3435_v4, 6  ;;  %v3440_v27 = vrot.slane %v3438_v0, 7  ;;  %v3060_v42 = vadd.f32 %v5648_v26, %v2613_v41  ;;  %v5942_v26 = vld [vmem:[#allocation5_spill] sm:$0xff]  ;;  %v1847_v4 = vunpack.c.l.b16 %v4314_v29  ;;  %v5779_v41 = vpop.f32.mrf.mxu3 }
 0x25a   : > { %v2167_v24 = vadd.f32 %v2101_v35, %v5942_v26  ;;  %v2294_v0 = vunpack.c.l.b16 %v2222_v1  ;;  %v1998_v29 = vshrl.u32 %v5750_v51, 16 }
 0x25b   : > { %v3441_v12 = vor.u32 %v3440_v27, %v3437_v46  ;;  %v3284_v54 = vadd.f32 %v3217_v58, %v3060_v42 }
 0x25d   : > { %v3442_v10 = vsel %vm5765_vm8, %v3433_v19, %v3441_v12  ;;  %v3421_v8 = vpack.c.bf16 %v3284_v54, %v3284_v54  ;;  %v3443_v46 = vrot.slane %v3441_v12, 4  ;;  %v2312_v19 = vpack.c.b16 %v2294_v0, %v2294_v0 }
 0x25e   : > { %3455 = vst.msk [vmem:[%s5507_s8 + $0x28] sm:$0xf] %vm3308_vm4, %v3442_v10  ;;  %v2548_v40 = vpop.f32.mrf.mxu2 }
 0x25f   : > { %v3445_v43 = vshrl.u32 %v3421_v8, 16  ;;  %v3448_v18 = vshll.u32 %v3421_v8, 16  ;;  %v2614_v58 = vadd.f32 %v2548_v40, %v2167_v24  ;;  %v2104_v11 = vpop.f32.mrf.mxu1  ;;  %v4624_v56 = vrot.slane %v3421_v8, 11 }
 0x260   : > { %v3222_v28 = vpop.f32.mrf.mxu0  ;;  %v2168_v3 = vadd.f32 %v2104_v11, %v5943_v16  ;;  %v2445_v40 = vshrl.u32 %v5753_v48, 16 }
 0x261   : > { %v3447_v35 = vrot.slane %v3445_v43, 6  ;;  %v3450_v7 = vrot.slane %v3448_v18, 7  ;;  %v3061_v2 = vadd.f32 %v5670_v57, %v2614_v58  ;;  %v1865_v57 = vpack.c.b16 %v1847_v4, %v1847_v4 }
 0x262   : > { %4399 = vmatmul.msk.bf16.gmra.mxu1 %vm302_vm1, %v1997_v33  ;;  %v2449_v43 = vshll.u32 %v2312_v19, 16  ;;  %v5806_v33 = vpop.f32.mrf.mxu3  ;;  %v2447_v0 = vor.u32 %v2445_v40, %v2443_v49 }
 0x263   : > { %v3451_v27 = vor.u32 %v3450_v7, %v3447_v35  ;;  %v3285_v42 = vadd.f32 %v3219_v9, %v3061_v2  ;;  %4481 = vmatmul.msk.bf16.gmra.mxu2 %vm302_vm1, %v2444_v6  ;;  %4620 = vmatmul.msk.bf16.gmra.mxu0 %vm302_vm1, %v3121_v45  ;;  %v2002_v1 = vshll.u32 %v1865_v57, 16  ;;  %v2000_v6 = vor.u32 %v1998_v29, %v1996_v60  ;;  %v5946_v7 = vld [vmem:[#allocation7_spill] sm:$0xff] }
 0x264   : > { %v2451_v51 = vrot.slane %v2449_v43, 1  ;;  %v3122_v45 = vrot.slane %v2312_v19, 1 }
 0x265   : > { %v3452_v54 = vsel %vm5765_vm8, %v3443_v46, %v3451_v27  ;;  %v3457_v5 = vpack.c.bf16 %v3285_v42, %v3285_v42  ;;  %v2004_v4 = vrot.slane %v2002_v1, 1 }
 0x266   : > { %3456 = vst.msk [vmem:[%s5507_s8 + $0x2c] sm:$0xf] %vm3308_vm4, %v3452_v54  ;;  %v2551_v12 = vpop.f32.mrf.mxu2  ;;  %v3123_v16 = vsel %vm3088_vm3, %v3120_v52, %v3122_v45 }
 0x267   : > { %v3467_v10 = vrot.slane %v3457_v5, 7  ;;  %v2615_v26 = vadd.f32 %v2551_v12, %v2168_v3  ;;  %v2106_v24 = vpop.f32.mrf.mxu1  ;;  %v2005_v54 = vsel %vm810_vm2, %v2000_v6, %v2004_v4  ;;  %v2452_v5 = vsel %vm810_vm2, %v2447_v0, %v2451_v51 }
 0x268   : > { %v3224_v11 = vpop.f32.mrf.mxu0  ;;  %v2169_v2 = vadd.f32 %v2106_v24, %v5946_v7  ;;  %vm3478_vm2 = vsmask.f32 256 }
 0x269   : > { %v3468_v18 = vsel %vm5795_vm12, %v4624_v56, %v3467_v10  ;;  %v3062_v58 = vadd.f32 %v5699_v23, %v2615_v26  ;;  %v3469_v27 = vrot.slane %v3467_v10, 4  ;;  %vm5824_vm3 = vmor %vm3478_vm2, %vm3479_vm14 }
 0x26a   : > { %3474 = vst.msk [vmem:[%s5507_s8 + $0x30] sm:$0xf] %vm3308_vm4, %v3468_v18  ;;  %v3010_v3 = vpop.f32.mrf.mxu3 }
 0x26b   : > { %v3286_v8 = vadd.f32 %v3222_v28, %v3062_v58 }
 0x26d   : > { %v3458_v35 = vpack.c.bf16 %v3286_v8, %v3286_v8 }
 0x26e   : > { %v2553_v46 = vpop.f32.mrf.mxu2 }
 0x26f   : > { %v3470_v42 = vrot.slane %v3458_v35, 7  ;;  %v2616_v57 = vadd.f32 %v2553_v46, %v2169_v2  ;;  %v2109_v23 = vpop.f32.mrf.mxu1  ;;  %v3482_v10 = vshrl.u32 %v3458_v35, 16 }
 0x270   : > { %v3227_v28 = vpop.f32.mrf.mxu0  ;;  %v2170_v56 = vadd.f32 %v2109_v23, %v5243_v36 }
 0x271   : > { %v3471_v60 = vsel %vm5795_vm12, %v3469_v27, %v3470_v42  ;;  %v3063_v49 = vadd.f32 %v5728_v37, %v2616_v57  ;;  %v4625_v18 = vrot.slane %v3482_v10, 11 }
 0x272   : > { %3475 = vst.msk [vmem:[%s5507_s8 + $0x34] sm:$0xf] %vm3308_vm4, %v3471_v60  ;;  %4400 = vmatmul.msk.bf16.gmra.mxu1 %vm302_vm1, %v2005_v54  ;;  %v3013_v0 = vpop.f32.mrf.mxu3 }
 0x273   : > { %v3287_v19 = vadd.f32 %v3224_v11, %v3063_v49  ;;  %4482 = vmatmul.msk.bf16.gmra.mxu2 %vm302_vm1, %v2452_v5  ;;  %4621 = vmatmul.msk.bf16.gmra.mxu0 %vm302_vm1, %v3123_v16 }
 0x275   : > { %v3476_v12 = vpack.c.bf16 %v3287_v19, %v3287_v19 }
 0x276   : > { %v2556_v37 = vpop.f32.mrf.mxu2 }
 0x277   : > { %v3487_v48 = vshrl.u32 %v3476_v12, 16  ;;  %v2617_v52 = vadd.f32 %v2556_v37, %v2170_v56  ;;  %v2111_v26 = vpop.f32.mrf.mxu1  ;;  %v3490_v29 = vshll.u32 %v3476_v12, 16 }
 0x278   : > { %v3229_v40 = vpop.f32.mrf.mxu0  ;;  %v2171_v6 = vadd.f32 %v2111_v26, %v5258_v22 }
 0x279   : > { %v3489_v24 = vrot.slane %v3487_v48, 7  ;;  %v3064_v1 = vadd.f32 %v5756_v63, %v2617_v52 }
 0x27b   : > { %v3492_v58 = vor.u32 %v3490_v29, %v3489_v24  ;;  %v3288_v36 = vadd.f32 %v3227_v28, %v3064_v1  ;;  %v3494_v27 = vrot.slane %v3489_v24, 4  ;;  %v3015_v28 = vpop.f32.mrf.mxu3 }
 0x27d   : > { %v3493_v11 = vsel %vm5824_vm3, %v4625_v18, %v3492_v58  ;;  %v3477_v8 = vpack.c.bf16 %v3288_v36, %v3288_v36 }
 0x27e   : > { %3505 = vst.msk [vmem:[%s5507_s8 + $0x38] sm:$0xf] %vm3308_vm4, %v3493_v11  ;;  %v2558_v4 = vpop.f32.mrf.mxu2 }
 0x27f   : > { %v3496_v63 = vshrl.u32 %v3477_v8, 16  ;;  %v2618_v51 = vadd.f32 %v2558_v4, %v2171_v6  ;;  %v2114_v35 = vpop.f32.mrf.mxu1  ;;  %v3499_v2 = vshll.u32 %v3477_v8, 16 }
 0x280   : > { %v3232_v46 = vpop.f32.mrf.mxu0  ;;  %v2172_v54 = vadd.f32 %v2114_v35, %v5272_v61 }
 0x281   : > { %v3498_v7 = vrot.slane %v3496_v63, 7  ;;  %v3065_v45 = vadd.f32 %v5779_v41, %v2618_v51 }
 0x283   : > { %v3501_v42 = vor.u32 %v3499_v2, %v3498_v7  ;;  %v3289_v57 = vadd.f32 %v3229_v40, %v3065_v45  ;;  %v3018_v26 = vpop.f32.mrf.mxu3 }
 0x285   : > { %v3502_v22 = vsel %vm5824_vm3, %v3494_v27, %v3501_v42  ;;  %v3507_v23 = vpack.c.bf16 %v3289_v57, %v3289_v57 }
 0x286   : > { %3506 = vst.msk [vmem:[%s5507_s8 + $0x3c] sm:$0xf] %vm3308_vm4, %v3502_v22  ;;  %v2561_v5 = vpop.f32.mrf.mxu2 }
 0x287   : > { %3509 = vst.msk [vmem:[%s5507_s8 + $0x40] sm:$0xf] %vm3308_vm4, %v3507_v23  ;;  %v2619_v60 = vadd.f32 %v2561_v5, %v2172_v54  ;;  %v2116_v49 = vpop.f32.mrf.mxu1 }
 0x288   : > { %v3234_v16 = vpop.f32.mrf.mxu0  ;;  %v2173_v56 = vadd.f32 %v2116_v49, %v5287_v62 }
 0x289   : > { %v3066_v41 = vadd.f32 %v5806_v33, %v2619_v60 }
 0x28b   : > { %v3290_v19 = vadd.f32 %v3232_v46, %v3066_v41  ;;  %v3020_v63 = vpop.f32.mrf.mxu3 }
 0x28d   : > { %v3508_v12 = vpack.c.bf16 %v3290_v19, %v3290_v19 }
 0x28e   : > { %v2563_v37 = vpop.f32.mrf.mxu2 }
 0x28f   : > { %3510 = vst.msk [vmem:[%s5507_s8 + $0x44] sm:$0xf] %vm3308_vm4, %v3508_v12  ;;  %v2620_v10 = vadd.f32 %v2563_v37, %v2173_v56  ;;  %v2119_v61 = vpop.f32.mrf.mxu1 }
 0x290   : > { %v3237_v52 = vpop.f32.mrf.mxu0  ;;  %v2174_v1 = vadd.f32 %v2119_v61, %v5300_v32 }
 0x291   : > { %v3067_v48 = vadd.f32 %v3010_v3, %v2620_v10 }
 0x293   : > { %v3291_v24 = vadd.f32 %v3234_v16, %v3067_v48  ;;  %v3023_v41 = vpop.f32.mrf.mxu3 }
 0x295   : > { %v3511_v29 = vpack.c.bf16 %v3291_v24, %v3291_v24 }
 0x296   : > { %v2566_v40 = vpop.f32.mrf.mxu2 }
 0x297   : > { %v3515_v18 = vshrl.u32 %v3511_v29, 16  ;;  %v3518_v33 = vshll.u32 %v3511_v29, 16  ;;  %v2621_v58 = vadd.f32 %v2566_v40, %v2174_v1  ;;  %v2121_v36 = vpop.f32.mrf.mxu1 }
 0x298   : > { %v3239_v6 = vpop.f32.mrf.mxu0  ;;  %v2175_v35 = vadd.f32 %v2121_v36, %v5315_v47 }
 0x299   : > { %v3517_v11 = vrot.slane %v3515_v18, 4  ;;  %v3520_v8 = vrot.slane %v3518_v33, 5  ;;  %v3068_v62 = vadd.f32 %v3013_v0, %v2621_v58 }
 0x29b   : > { %v3292_v4 = vadd.f32 %v3237_v52, %v3068_v62  ;;  %v3521_v51 = vor.u32 %v3520_v8, %v3517_v11  ;;  %v3025_v33 = vpop.f32.mrf.mxu3 }
 0x29d   : > { %v3512_v3 = vpack.c.bf16 %v3292_v4, %v3292_v4  ;;  %v3522_v27 = vrot.slane %v3521_v51, 4 }
 0x29e   : > { %v2568_v7 = vpop.f32.mrf.mxu2 }
 0x29f   : > { %v3524_v2 = vshll.u32 %v3512_v3, 16  ;;  %v3528_v45 = vshrl.u32 %v3512_v3, 16  ;;  %v2622_v32 = vadd.f32 %v2568_v7, %v2175_v35  ;;  %v2124_v46 = vpop.f32.mrf.mxu1 }
 0x2a0   : > { %v3242_v23 = vpop.f32.mrf.mxu0  ;;  %v2176_v47 = vadd.f32 %v2124_v46, %v5328_v14 }
 0x2a1   : > { %v3526_v42 = vrot.slane %v3524_v2, 5  ;;  %v3530_v57 = vrot.slane %v3528_v45, 4  ;;  %v3069_v22 = vadd.f32 %v3015_v28, %v2622_v32 }
 0x2a3   : > { %v3527_v0 = vsel %vm5571_vm7, %v3522_v27, %v3526_v42  ;;  %v3293_v54 = vadd.f32 %v3239_v6, %v3069_v22  ;;  %v3531_v5 = vor.u32 %v3530_v57, %v3526_v42  ;;  %v3028_v45 = vpop.f32.mrf.mxu3 }
 0x2a4   : > { %3540 = vst.msk [vmem:[%s5507_s8 + $0x48] sm:$0xf] %vm3308_vm4, %v3527_v0 }
 0x2a5   : > { %v3513_v60 = vpack.c.bf16 %v3293_v54, %v3293_v54  ;;  %v3532_v56 = vrot.slane %v3531_v5, 4 }
 0x2a6   : > { %v2571_v49 = vpop.f32.mrf.mxu2 }
 0x2a7   : > { %v3534_v16 = vshll.u32 %v3513_v60, 16  ;;  %v2623_v19 = vadd.f32 %v2571_v49, %v2176_v47  ;;  %v2126_v12 = vpop.f32.mrf.mxu1  ;;  %v4626_v29 = vrot.slane %v3513_v60, 9 }
 0x2a8   : > { %v3244_v10 = vpop.f32.mrf.mxu0  ;;  %v2177_v24 = vadd.f32 %v2126_v12, %v5343_v20 }
 0x2a9   : > { %v3536_v37 = vrot.slane %v3534_v16, 5  ;;  %v3070_v28 = vadd.f32 %v3018_v26, %v2623_v19 }
 0x2ab   : > { %v3537_v61 = vsel %vm5571_vm7, %v3532_v56, %v3536_v37  ;;  %v3294_v48 = vadd.f32 %v3242_v23, %v3070_v28  ;;  %v3030_v12 = vpop.f32.mrf.mxu3 }
 0x2ac   : > { %3541 = vst.msk [vmem:[%s5507_s8 + $0x4c] sm:$0xf] %vm3308_vm4, %v3537_v61 }
 0x2ad   : > { %v3542_v52 = vpack.c.bf16 %v3294_v48, %v3294_v48 }
 0x2ae   : > { %v2573_v14 = vpop.f32.mrf.mxu2 }
 0x2af   : > { %v3549_v1 = vrot.slane %v3542_v52, 5  ;;  %v2624_v40 = vadd.f32 %v2573_v14, %v2177_v24  ;;  %v2129_v18 = vpop.f32.mrf.mxu1 }
 0x2b0   : > { %v3247_v36 = vpop.f32.mrf.mxu0  ;;  %v2178_v8 = vadd.f32 %v2129_v18, %v5356_v55 }
 0x2b1   : > { %v3550_v26 = vsel %vm5614_vm10, %v4626_v29, %v3549_v1  ;;  %v3071_v58 = vadd.f32 %v3020_v63, %v2624_v40  ;;  %v3551_v62 = vrot.slane %v3549_v1, 4 }
 0x2b2   : > { %3556 = vst.msk [vmem:[%s5507_s8 + $0x50] sm:$0xf] %vm3308_vm4, %v3550_v26 }
 0x2b3   : > { %v3295_v39 = vadd.f32 %v3244_v10, %v3071_v58 }
 0x2b5   : > { %v3543_v11 = vpack.c.bf16 %v3295_v39, %v3295_v39  ;;  %v3033_v39 = vpop.f32.mrf.mxu3 }
 0x2b6   : > { %v2576_v20 = vpop.f32.mrf.mxu2 }
 0x2b7   : > { %v3552_v6 = vrot.slane %v3543_v11, 5  ;;  %v3561_v4 = vshrl.u32 %v3543_v11, 16  ;;  %v3564_v51 = vshll.u32 %v3543_v11, 16  ;;  %v2625_v3 = vadd.f32 %v2576_v20, %v2178_v8  ;;  %v2131_v35 = vpop.f32.mrf.mxu1 }
 0x2b8   : > { %v3249_v63 = vpop.f32.mrf.mxu0  ;;  %v2179_v55 = vadd.f32 %v2131_v35, %v5371_v59 }
 0x2b9   : > { %v3553_v7 = vsel %vm5614_vm10, %v3551_v62, %v3552_v6  ;;  %v3072_v2 = vadd.f32 %v3023_v41, %v2625_v3  ;;  %v3563_v32 = vrot.slane %v3561_v4, 5  ;;  %v3566_v46 = vrot.slane %v3564_v51, 6 }
 0x2ba   : > { %3557 = vst.msk [vmem:[%s5507_s8 + $0x54] sm:$0xf] %vm3308_vm4, %v3553_v7 }
 0x2bb   : > { %v3296_v27 = vadd.f32 %v3247_v36, %v3072_v2  ;;  %v3567_v22 = vor.u32 %v3566_v46, %v3563_v32 }
 0x2bd   : > { %v3558_v42 = vpack.c.bf16 %v3296_v27, %v3296_v27  ;;  %v3568_v41 = vrot.slane %v3567_v22, 4  ;;  %v3035_v27 = vpop.f32.mrf.mxu3 }
 0x2be   : > { %v2578_v57 = vpop.f32.mrf.mxu2 }
 0x2bf   : > { %v3570_v23 = vshrl.u32 %v3558_v42, 16  ;;  %v3573_v0 = vshll.u32 %v3558_v42, 16  ;;  %v2626_v54 = vadd.f32 %v2578_v57, %v2179_v55  ;;  %v2134_v5 = vpop.f32.mrf.mxu1 }
 0x2c0   : > { %v3252_v49 = vpop.f32.mrf.mxu0  ;;  %v2180_v59 = vadd.f32 %v2134_v5, %v5384_v50 }
 0x2c1   : > { %v3572_v25 = vrot.slane %v3570_v23, 5  ;;  %v3575_v60 = vrot.slane %v3573_v0, 6  ;;  %v3073_v47 = vadd.f32 %v3025_v33, %v2626_v54 }
 0x2c3   : > { %v3576_v16 = vor.u32 %v3575_v60, %v3572_v25  ;;  %v3297_v19 = vadd.f32 %v3249_v63, %v3073_v47 }
 0x2c5   : > { %v3577_v56 = vsel %vm5674_vm13, %v3568_v41, %v3576_v16  ;;  %v3559_v37 = vpack.c.bf16 %v3297_v19, %v3297_v19  ;;  %v3578_v40 = vrot.slane %v3576_v16, 4 }
 0x2c6   : > { %3590 = vst.msk [vmem:[%s5507_s8 + $0x58] sm:$0xf] %vm3308_vm4, %v3577_v56  ;;  %v2581_v28 = vpop.f32.mrf.mxu2 }
 0x2c7   : > { %v3580_v10 = vshrl.u32 %v3559_v37, 16  ;;  %v3583_v61 = vshll.u32 %v3559_v37, 16  ;;  %v2627_v48 = vadd.f32 %v2581_v28, %v2180_v59  ;;  %v2136_v52 = vpop.f32.mrf.mxu1  ;;  %v4627_v11 = vrot.slane %v3559_v37, 10 }
 0x2c8   : > { %v3254_v1 = vpop.f32.mrf.mxu0  ;;  %v2181_v58 = vadd.f32 %v2136_v52, %v5399_v44 }
 0x2c9   : > { %v3582_v24 = vrot.slane %v3580_v10, 5  ;;  %v3585_v14 = vrot.slane %v3583_v61, 6  ;;  %v3074_v29 = vadd.f32 %v3028_v45, %v2627_v48 }
 0x2cb   : > { %v3586_v18 = vor.u32 %v3585_v14, %v3582_v24  ;;  %v3298_v33 = vadd.f32 %v3252_v49, %v3074_v29 }
 0x2cd   : > { %v3587_v26 = vsel %vm5674_vm13, %v3578_v40, %v3586_v18  ;;  %v3592_v50 = vpack.c.bf16 %v3298_v33, %v3298_v33 }
 0x2ce   : > { %3591 = vst.msk [vmem:[%s5507_s8 + $0x5c] sm:$0xf] %vm3308_vm4, %v3587_v26  ;;  %v2583_v36 = vpop.f32.mrf.mxu2 }
 0x2cf   : > { %v3599_v8 = vrot.slane %v3592_v50, 6  ;;  %v2628_v62 = vadd.f32 %v2583_v36, %v2181_v58  ;;  %v2139_v20 = vpop.f32.mrf.mxu1 }
 0x2d0   : > { %v3257_v51 = vpop.f32.mrf.mxu0  ;;  %v2182_v44 = vadd.f32 %v2139_v20, %v5412_v53 }
 0x2d1   : > { %v3600_v6 = vsel %vm5714_vm0, %v4627_v11, %v3599_v8  ;;  %v3075_v4 = vadd.f32 %v3030_v12, %v2628_v62  ;;  %v3601_v35 = vrot.slane %v3599_v8, 4  ;;  %v3038_v12 = vpop.f32.mrf.mxu3 }
 0x2d2   : > { %3606 = vst.msk [vmem:[%s5507_s8 + $0x60] sm:$0xf] %vm3308_vm4, %v3600_v6 }
 0x2d3   : > { %v3299_v38 = vadd.f32 %v3254_v1, %v3075_v4 }
 0x2d5   : > { %v3593_v3 = vpack.c.bf16 %v3299_v38, %v3299_v38 }
 0x2d6   : > { %v2586_v7 = vpop.f32.mrf.mxu2 }
 0x2d7   : > { %v3602_v2 = vrot.slane %v3593_v3, 6  ;;  %v3611_v63 = vshrl.u32 %v3593_v3, 16  ;;  %v3614_v45 = vshll.u32 %v3593_v3, 16  ;;  %v2629_v32 = vadd.f32 %v2586_v7, %v2182_v44  ;;  %v2141_v46 = vpop.f32.mrf.mxu1 }
 0x2d8   : > { %v3259_v57 = vpop.f32.mrf.mxu0  ;;  %v2183_v53 = vadd.f32 %v2141_v46, %v5427_v15 }
 0x2d9   : > { %v3603_v42 = vsel %vm5714_vm0, %v3601_v35, %v3602_v2  ;;  %v3076_v55 = vadd.f32 %v3033_v39, %v2629_v32  ;;  %v3613_v22 = vrot.slane %v3611_v63, 6  ;;  %v3616_v23 = vrot.slane %v3614_v45, 7  ;;  %v3040_v58 = vpop.f32.mrf.mxu3 }
 0x2da   : > { %3607 = vst.msk [vmem:[%s5507_s8 + $0x64] sm:$0xf] %vm3308_vm4, %v3603_v42 }
 0x2db   : > { %v3300_v0 = vadd.f32 %v3257_v51, %v3076_v55  ;;  %v3617_v25 = vor.u32 %v3616_v23, %v3613_v22 }
 0x2dd   : > { %v3608_v54 = vpack.c.bf16 %v3300_v0, %v3300_v0  ;;  %v3618_v56 = vrot.slane %v3617_v25, 4 }
 0x2de   : > { %v2588_v5 = vpop.f32.mrf.mxu2 }
 0x2df   : > { %v3620_v60 = vshrl.u32 %v3608_v54, 16  ;;  %v3623_v47 = vshll.u32 %v3608_v54, 16  ;;  %v2630_v49 = vadd.f32 %v2588_v5, %v2183_v53  ;;  %v2144_v41 = vpop.f32.mrf.mxu1 }
 0x2e0   : > { %v3262_v28 = vpop.f32.mrf.mxu0  ;;  %v2184_v15 = vadd.f32 %v2144_v41, %v5440_v17 }
 0x2e1   : > { %v3622_v16 = vrot.slane %v3620_v60, 6  ;;  %v3625_v30 = vrot.slane %v3623_v47, 7  ;;  %v3077_v19 = vadd.f32 %v3035_v27, %v2630_v49 }
 0x2e3   : > { %v3626_v37 = vor.u32 %v3625_v30, %v3622_v16  ;;  %v3301_v59 = vadd.f32 %v3259_v57, %v3077_v19 }
 0x2e5   : > { %v3627_v10 = vsel %vm5765_vm8, %v3618_v56, %v3626_v37  ;;  %v3609_v61 = vpack.c.bf16 %v3301_v59, %v3301_v59  ;;  %v3628_v33 = vrot.slane %v3626_v37, 4 }
 0x2e6   : > { %3640 = vst.msk [vmem:[%s5507_s8 + $0x68] sm:$0xf] %vm3308_vm4, %v3627_v10  ;;  %v2591_v48 = vpop.f32.mrf.mxu2 }
 0x2e7   : > { %v3630_v52 = vshrl.u32 %v3609_v61, 16  ;;  %v3633_v24 = vshll.u32 %v3609_v61, 16  ;;  %v2631_v14 = vadd.f32 %v2591_v48, %v2184_v15  ;;  %v2146_v29 = vpop.f32.mrf.mxu1  ;;  %v4628_v62 = vrot.slane %v3609_v61, 11 }
 0x2e8   : > { %v2185_v39 = vadd.f32 %v2146_v29, %v5457_v31  ;;  %v3264_v11 = vpop.f32.mrf.mxu0  ;;  %v3043_v31 = vpop.f32.mrf.mxu3 }
 0x2e9   : > { %v3632_v1 = vrot.slane %v3630_v52, 6  ;;  %v3635_v40 = vrot.slane %v3633_v24, 7  ;;  %v3078_v18 = vadd.f32 %v3038_v12, %v2631_v14 }
 0x2eb   : > { %v3636_v26 = vor.u32 %v3635_v40, %v3632_v1  ;;  %v3302_v50 = vadd.f32 %v3262_v28, %v3078_v18 }
 0x2ed   : > { %v3637_v36 = vsel %vm5765_vm8, %v3628_v33, %v3636_v26  ;;  %v3642_v17 = vpack.c.bf16 %v3302_v50, %v3302_v50 }
 0x2ee   : > { %3641 = vst.msk [vmem:[%s5507_s8 + $0x6c] sm:$0xf] %vm3308_vm4, %v3637_v36  ;;  %v2593_v8 = vpop.f32.mrf.mxu2 }
 0x2ef   : > { %v3649_v20 = vrot.slane %v3642_v17, 7  ;;  %v2632_v6 = vadd.f32 %v2593_v8, %v2185_v39  ;;  %v2149_v4 = vpop.f32.mrf.mxu1 }
 0x2f0   : > { %v2186_v44 = vadd.f32 %v2149_v4, %v5471_v13  ;;  %v3267_v45 = vpop.f32.mrf.mxu0  ;;  %v3045_v54 = vpop.f32.mrf.mxu3 }
 0x2f1   : > { %v3650_v51 = vsel %vm5795_vm12, %v4628_v62, %v3649_v20  ;;  %v3079_v38 = vadd.f32 %v3040_v58, %v2632_v6  ;;  %v3651_v7 = vrot.slane %v3649_v20, 4 }
 0x2f2   : > { %3656 = vst.msk [vmem:[%s5507_s8 + $0x70] sm:$0xf] %vm3308_vm4, %v3650_v51 }
 0x2f3   : > { %v3303_v21 = vadd.f32 %v3264_v11, %v3079_v38 }
 0x2f5   : > { %v3643_v3 = vpack.c.bf16 %v3303_v21, %v3303_v21 }
 0x2f6   : > { %v2596_v35 = vpop.f32.mrf.mxu2 }
 0x2f7   : > { %v3652_v2 = vrot.slane %v3643_v3, 7  ;;  %v2633_v63 = vadd.f32 %v2596_v35, %v2186_v44  ;;  %v2151_v27 = vpop.f32.mrf.mxu1  ;;  %v3661_v13 = vshrl.u32 %v3643_v3, 16 }
 0x2f8   : > { %v2187_v57 = vadd.f32 %v2151_v27, %v5488_v34  ;;  %v3269_v9 = vpop.f32.mrf.mxu0 }
 0x2f9   : > { %v3653_v32 = vsel %vm5795_vm12, %v3651_v7, %v3652_v2  ;;  %v3080_v46 = vadd.f32 %v3043_v31, %v2633_v63  ;;  %v4629_v60 = vrot.slane %v3661_v13, 11 }
 0x2fa   : > { %3657 = vst.msk [vmem:[%s5507_s8 + $0x74] sm:$0xf] %vm3308_vm4, %v3653_v32 }
 0x2fb   : > { %v3304_v42 = vadd.f32 %v3267_v45, %v3080_v46 }
 0x2fd   : > { %v3658_v55 = vpack.c.bf16 %v3304_v42, %v3304_v42 }
 0x2fe   : > { %v2598_v22 = vpop.f32.mrf.mxu2 }
 0x2ff   : > { %v3666_v23 = vshrl.u32 %v3658_v55, 16  ;;  %v2634_v0 = vadd.f32 %v2598_v22, %v2187_v57  ;;  %v3669_v5 = vshll.u32 %v3658_v55, 16 }
 0x301   : > { %v3668_v53 = vrot.slane %v3666_v23, 7  ;;  %v3081_v25 = vadd.f32 %v3045_v54, %v2634_v0 }
 0x303   : > { %v3671_v47 = vor.u32 %v3669_v5, %v3668_v53  ;;  %v3305_v49 = vadd.f32 %v3269_v9, %v3081_v25  ;;  %v3673_v12 = vrot.slane %v3668_v53, 4 }
 0x305   : > { %v3672_v41 = vsel %vm5824_vm3, %v4629_v60, %v3671_v47  ;;  %v3659_v16 = vpack.c.bf16 %v3305_v49, %v3305_v49 }
 0x306   : > { %3684 = vst.msk [vmem:[%s5507_s8 + $0x78] sm:$0xf] %vm3308_vm4, %v3672_v41 }
 0x307   : > { %v3675_v34 = vshrl.u32 %v3659_v16, 16  ;;  %v3678_v19 = vshll.u32 %v3659_v16, 16 }
 0x309   : > { %v3677_v30 = vrot.slane %v3675_v34, 7 }
 0x30b   : > { %v3680_v56 = vor.u32 %v3678_v19, %v3677_v30 }
 0x30d   : > { %v3681_v37 = vsel %vm5824_vm3, %v3673_v12, %v3680_v56 }
 0x30e   : > { %3685 = vst.msk [vmem:[%s5507_s8 + $0x7c] sm:$0xf] %vm3308_vm4, %v3681_v37 }
 0x30f PF: > { %s12_s9 = sadd.s32 1, %s4794_s9  }
 0x310   : > { %p9_p4 = scmp.ge.s32.totalorder %s12_s9, 4  }
 0x312   :  { %11 = sbr.rel (!%p9_p4) target bundleno = 1 (0x1), region = 69 }

</bundles_post_ra>
